<compile_context>
chip_gen: v5e
topology: v5e:2x2
jax: 0.10.0
libtpu: 0.0.40
codegen_flags: <defaults>
</compile_context>

<pallas_src>
import functools
import numpy as np
import jax
import jax.numpy as jnp
from jax import lax
from jax.experimental import pallas as pl
from jax.experimental.pallas import tpu as pltpu


def _round_up(n, m):
    return ((n + m - 1) // m) * m


# ----------------------------- fused GRU + multi-head kernel -----------------------------
def fused_gru_heads_kernel(x_ref, wih_ref, whh_ref, bgi_ref, bhn_ref,
                           whd_ref, bhd_ref, mask_ref, out_ref,
                           gi_scr, rnn_scr, y_scr,
                           *, b_pad, sig_lo, sig_hi):
    # x_ref:    (T*Bp, I)   time-major-flattened input (row t*Bp + b)
    # wih_ref:  (I, 3H)     columns [r | z | n]   (PyTorch weight_ih_l0.T)
    # whh_ref:  (H, 3H)
    # bgi_ref:  (1, 3H)     b_ih with b_hh_r / b_hh_z folded in
    # bhn_ref:  (1, H)      b_hh_n (must stay inside the r * (...) term)
    # whd_ref:  (H, OP)     concatenated head weights, zero-padded to OP = 128 lanes
    # bhd_ref:  (1, OP)
    # mask_ref: (T*Bp, 1)   1.0 where t < lengths[b] else 0.0 (pad_packed_sequence semantics)
    # out_ref:  (B, T, OP)  batch-first, lane-dense fused head outputs
    # gi_scr:   (T*Bp, 3H)  hoisted input projection
    # rnn_scr:  (T*Bp, H)   time-major rnn outputs
    # y_scr:    (T*Bp, OP)  fused head output staging
    H = whh_ref.shape[0]
    TB = rnn_scr.shape[0]
    t_steps = TB // b_pad
    OP = whd_ref.shape[1]
    B_out, T_out, _ = out_ref.shape
    assert TB == T_out * b_pad and t_steps == T_out

    # ---- Phase 1: hoisted input projection (independent of h -> off the serial critical path) ----
    gi_scr[...] = (jnp.dot(x_ref[...], wih_ref[...], preferred_element_type=jnp.float32)
                   + bgi_ref[...])

    # ---- Phase 2: serial GRU recurrence; h lives in the fori_loop carry (no VMEM round trip) ----
    whh = whh_ref[...]                                       # loop-invariant (H, 3H)
    b_hn = jnp.broadcast_to(bhn_ref[...], (b_pad, H))        # broadcast hoisted out of the loop
    h0 = jnp.zeros((b_pad, H), jnp.float32)

    def step(t, h):
        row0 = pl.multiple_of(t * b_pad, b_pad)              # aligned sublane slice
        gi = gi_scr[pl.ds(row0, b_pad), :]                   # (Bp, 3H) precomputed gates
        gh = jnp.dot(h, whh, preferred_element_type=jnp.float32)   # only matmul in the loop
        r = jax.nn.sigmoid(gi[:, :H] + gh[:, :H])
        z = jax.nn.sigmoid(gi[:, H:2 * H] + gh[:, H:2 * H])
        n = jnp.tanh(gi[:, 2 * H:] + r * (gh[:, 2 * H:] + b_hn))
        h_new = n + z * (h - n)                              # == (1 - z) * n + z * h
        rnn_scr[pl.ds(row0, b_pad), :] = h_new               # ONE contiguous (Bp, H) store
        return h_new

    lax.fori_loop(0, t_steps, step, h0, unroll=(t_steps <= 32))

    # ---- Phase 3: single fused head matmul + masked activations on the whole rnn scratch ----
    rnn_masked = jnp.where(mask_ref[...] > 0.0, rnn_scr[...], 0.0)   # zero past sequence length
    y = (jnp.dot(rnn_masked, whd_ref[...], preferred_element_type=jnp.float32)
         + bhd_ref[...])                                     # (T*Bp, OP)
    col = lax.broadcasted_iota(jnp.int32, (TB, OP), 1)
    y = jnp.where((col >= sig_lo) & (col < sig_hi), jax.nn.sigmoid(y), y)   # installment / loan
    y = jnp.where(col >= sig_hi, jnp.maximum(y, 0.0), y)                    # recovery (+ padding)
    y_scr[...] = y

    # Batch-first, lane-dense emission: one strided read per real batch row (rows b, b+Bp, ...).
    for b in range(B_out):                                   # static unroll over real batches
        out_ref[b] = y_scr[pl.ds(b, T_out, stride=b_pad), :]


# ----------------------------- parameter prep (one-time folding) -----------------------------
def prepare_params(params):
    H = params["w_hh_t"].shape[0]
    # Fold b_hh into the r/z gate biases of the precomputed input projection; keep b_hh_n separate.
    b_gi = params["b_ih"].at[:, :2 * H].add(params["b_hh"][:, :2 * H])
    b_hn = params["b_hh"][:, 2 * H:]
    w_hd = jnp.concatenate([params["w_state"], params["w_inst"],
                            params["w_loan"], params["w_rec"]], axis=1)
    b_hd = jnp.concatenate([params["b_state"], params["b_inst"],
                            params["b_loan"], params["b_rec"]], axis=1)
    n_state = params["w_state"].shape[1]
    n_inst = params["w_inst"].shape[1]
    n_loan = params["w_loan"].shape[1]
    n_rec = params["w_rec"].shape[1]
    n_out = n_state + n_inst + n_loan + n_rec
    opad = _round_up(max(n_out, 128), 128)        # lane-dense head output
    w_hd = jnp.pad(w_hd, ((0, 0), (0, opad - n_out)))
    b_hd = jnp.pad(b_hd, ((0, 0), (0, opad - n_out)))
    return {
        "w_ih_t": params["w_ih_t"], "w_hh_t": params["w_hh_t"],
        "b_gi": b_gi, "b_hn": b_hn, "w_heads": w_hd, "b_heads": b_hd,
        "n_state": n_state, "n_inst": n_inst, "n_loan": n_loan, "n_rec": n_rec,
    }


# ----------------------------- model wrapper -----------------------------
def multitask_forward(params, x_bti, lengths):
    """x_bti: [B, T, I] float32 (batch_first=True); lengths: host list / np array.
    Returns batch-first (state, installment, loan, recovery) with time dim = max(lengths)."""
    prep = prepare_params(params)
    lengths_np = np.asarray(lengths, dtype=np.int32)
    B, _, I = x_bti.shape
    H = prep["w_hh_t"].shape[0]
    # TODO(synk): T_out / lengths are consumed host-side (as in pack_padded_sequence); pass device
    # scalars + a fixed max T if this is ever called inside a jitted hot loop.
    T_out = int(lengths_np.max())

    B_pad = _round_up(max(B, 8), 8)               # full sublanes for the recurrence
    TB = T_out * B_pad
    OPAD = prep["w_heads"].shape[1]
    n_state, n_inst, n_loan, n_rec = (prep["n_state"], prep["n_inst"],
                                      prep["n_loan"], prep["n_rec"])

    # Padded, time-major-flattened input (row t*B_pad + b).
    x_tm = jnp.zeros((T_out, B_pad, I), jnp.float32).at[:, :B, :].set(
        jnp.transpose(x_bti[:, :T_out, :].astype(jnp.float32), (1, 0, 2)))
    x_flat = x_tm.reshape(TB, I)

    # Length mask built once (pad_packed_sequence semantics); padded batch rows get length 0.
    lens = jnp.zeros((B_pad,), jnp.int32).at[:B].set(jnp.asarray(lengths_np))
    mask_flat = (jnp.arange(T_out, dtype=jnp.int32)[:, None] < lens[None, :]
                 ).astype(jnp.float32).reshape(TB, 1)

    kernel = functools.partial(fused_gru_heads_kernel, b_pad=B_pad,
                               sig_lo=n_state, sig_hi=n_state + n_inst + n_loan)

    # Deliberate VMEM budget: everything-resident footprint (layout-padded) with headroom.
    def _padded_bytes(shape, itemsize=4):
        s = list(shape)
        if len(s) >= 1:
            s[-1] = _round_up(s[-1], 128)
        if len(s) >= 2:
            s[-2] = _round_up(s[-2], 8)
        return int(np.prod(s)) * itemsize

    footprint = sum(_padded_bytes(s) for s in [
        (TB, I), (I, 3 * H), (H, 3 * H), (1, 3 * H), (1, H), (H, OPAD), (1, OPAD), (TB, 1),
        (B, T_out, OPAD),                         # output
        (TB, 3 * H), (TB, H), (TB, OPAD),         # scratch
    ])
    vmem_limit = int(min(max(2 * footprint, 16 * 2 ** 20), 64 * 2 ** 20))

    out = pl.pallas_call(
        kernel,
        out_shape=jax.ShapeDtypeStruct((B, T_out, OPAD), jnp.float32),
        in_specs=[pl.BlockSpec(memory_space=pltpu.MemorySpace.VMEM) for _ in range(8)],
        out_specs=pl.BlockSpec(memory_space=pltpu.MemorySpace.VMEM),
        scratch_shapes=[
            pltpu.VMEM((TB, 3 * H), jnp.float32),     # hoisted input projection
            pltpu.VMEM((TB, H), jnp.float32),         # time-major rnn outputs
            pltpu.VMEM((TB, OPAD), jnp.float32),      # fused head output staging
        ],
        compiler_params=pltpu.CompilerParams(vmem_limit_bytes=vmem_limit),
    )(x_flat, prep["w_ih_t"], prep["w_hh_t"], prep["b_gi"], prep["b_hn"],
      prep["w_heads"], prep["b_heads"], mask_flat)

    s0 = n_state
    s1 = s0 + n_inst
    s2 = s1 + n_loan
    s3 = s2 + n_rec
    return out[..., :s0], out[..., s0:s1], out[..., s1:s2], out[..., s2:s3]


# ----------------------------- parameter init (matches PyTorch layout, transposed) -----------------------------
def init_params(key, input_size, hidden_size,
                len_state=7, len_inst=1, len_loan=1, len_rec=1):
    ks = jax.random.split(key, 12)
    k_rnn = 1.0 / np.sqrt(hidden_size)
    k_lin = 1.0 / np.sqrt(hidden_size)
    u = lambda k, shape, bound: jax.random.uniform(k, shape, jnp.float32, -bound, bound)
    return {
        # PyTorch stores W_ih as (3H, I); we keep the transpose for row-vector matmul.
        "w_ih_t": u(ks[0], (input_size, 3 * hidden_size), k_rnn),
        "w_hh_t": u(ks[1], (hidden_size, 3 * hidden_size), k_rnn),
        "b_ih": u(ks[2], (1, 3 * hidden_size), k_rnn),
        "b_hh": u(ks[3], (1, 3 * hidden_size), k_rnn),
        "w_state": u(ks[4], (hidden_size, len_state), k_lin),
        "b_state": u(ks[5], (1, len_state), k_lin),
        "w_inst": u(ks[6], (hidden_size, len_inst), k_lin),
        "b_inst": u(ks[7], (1, len_inst), k_lin),
        "w_loan": u(ks[8], (hidden_size, len_loan), k_lin),
        "b_loan": u(ks[9], (1, len_loan), k_lin),
        "w_rec": u(ks[10], (hidden_size, len_rec), k_lin),
        "b_rec": u(ks[11], (1, len_rec), k_lin),
    }


# ----------------------------- pure-JAX reference (for verification) -----------------------------
def reference_forward(params, x_bti, lengths):
    lengths_np = np.asarray(lengths, dtype=np.int32)
    T_out = int(lengths_np.max())
    B, _, I = x_bti.shape
    H = params["w_hh_t"].shape[0]
    x = x_bti[:, :T_out, :]

    def step(h, x_t):
        gi = x_t @ params["w_ih_t"] + params["b_ih"]
        gh = h @ params["w_hh_t"] + params["b_hh"]
        r = jax.nn.sigmoid(gi[:, :H] + gh[:, :H])
        z = jax.nn.sigmoid(gi[:, H:2 * H] + gh[:, H:2 * H])
        n = jnp.tanh(gi[:, 2 * H:] + r * gh[:, 2 * H:])
        h_new = (1.0 - z) * n + z * h
        return h_new, h_new

    _, outs = jax.lax.scan(step, jnp.zeros((B, H), jnp.float32), jnp.transpose(x, (1, 0, 2)))
    rnn_out = jnp.transpose(outs, (1, 0, 2))                    # [B, T_out, H]
    mask = (jnp.arange(T_out)[None, :, None] < jnp.asarray(lengths_np)[:, None, None])
    rnn_out = jnp.where(mask, rnn_out, 0.0)

    state = rnn_out @ params["w_state"] + params["b_state"]
    inst = jax.nn.sigmoid(rnn_out @ params["w_inst"] + params["b_inst"])
    loan = jax.nn.sigmoid(rnn_out @ params["w_loan"] + params["b_loan"])
    rec = jnp.maximum(rnn_out @ params["w_rec"] + params["b_rec"], 0.0)
    return state, inst, loan, rec


if __name__ == "__main__":
    B, T, I, H = 4, 8, 16, 32
    key = jax.random.PRNGKey(0)
    k_x, k_p = jax.random.split(key)

    x = jax.random.normal(k_x, (B, T, I), jnp.float32)
    lengths = [8, 5, 7, 3]
    params = init_params(k_p, I, H)

    outs = multitask_forward(params, x, lengths)
    outs = jax.block_until_ready(outs)

    refs = reference_forward(params, x, lengths)
    for o, r in zip(outs, refs):
        np.testing.assert_allclose(np.asarray(o), np.asarray(r), rtol=1e-4, atol=1e-4)

    assert outs[0].shape == (B, max(lengths), 7)
    assert outs[1].shape == (B, max(lengths), 1)
    assert outs[2].shape == (B, max(lengths), 1)
    assert outs[3].shape == (B, max(lengths), 1)

    print("KERNEL_OK")
</pallas_src>

<mosaic_0001>
module attributes {stable_mosaic.version = 11 : i64} {
  func.func @fused_gru_heads_kernel(%arg0: memref<64x16xf32, #tpu.memory_space<vmem>>, %arg1: memref<16x96xf32, #tpu.memory_space<vmem>>, %arg2: memref<32x96xf32, #tpu.memory_space<vmem>>, %arg3: memref<1x96xf32, #tpu.memory_space<vmem>>, %arg4: memref<1x32xf32, #tpu.memory_space<vmem>>, %arg5: memref<32x128xf32, #tpu.memory_space<vmem>>, %arg6: memref<1x128xf32, #tpu.memory_space<vmem>>, %arg7: memref<64x1xf32, #tpu.memory_space<vmem>>, %arg8: memref<4x8x128xf32, #tpu.memory_space<vmem>>, %arg9: memref<64x96xf32, #tpu.memory_space<vmem>>, %arg10: memref<64x32xf32, #tpu.memory_space<vmem>>, %arg11: memref<64x128xf32, #tpu.memory_space<vmem>>) attributes {dimension_semantics = [], scalar_prefetch = 0 : i64, scratch_operands = 3 : i64, tpu.core_type = #tpu.core_type<tc>} {
    %c0 = arith.constant 0 : index
    %c0_0 = arith.constant 0 : index
    %0 = vector.load %arg0[%c0, %c0_0] : memref<64x16xf32, #tpu.memory_space<vmem>>, vector<64x16xf32>
    %c0_1 = arith.constant 0 : index
    %c0_2 = arith.constant 0 : index
    %1 = vector.load %arg1[%c0_1, %c0_2] : memref<16x96xf32, #tpu.memory_space<vmem>>, vector<16x96xf32>
    %cst = arith.constant dense<0.000000e+00> : vector<64x96xf32>
    %2 = tpu.matmul %0, %1, %cst {dimension_numbers = #tpu.dot_dimension_numbers<[1], [0], [0], [1], [0, 0, 1, 1], [], []>} : vector<64x16xf32>, vector<16x96xf32>, vector<64x96xf32> -> vector<64x96xf32>
    %c0_3 = arith.constant 0 : index
    %c0_4 = arith.constant 0 : index
    %3 = vector.load %arg3[%c0_3, %c0_4] : memref<1x96xf32, #tpu.memory_space<vmem>>, vector<1x96xf32>
    %4 = vector.broadcast %3 : vector<1x96xf32> to vector<64x96xf32>
    %5 = arith.addf %2, %4 : vector<64x96xf32>
    %c0_5 = arith.constant 0 : index
    %c0_6 = arith.constant 0 : index
    %6 = vector.load %arg9[%c0_5, %c0_6] : memref<64x96xf32, #tpu.memory_space<vmem>>, vector<64x96xf32>
    tpu.vector_store %arg9[%c0_5, %c0_6], %5 {strides = array<i32>} : memref<64x96xf32, #tpu.memory_space<vmem>>, vector<64x96xf32>,
    %c0_7 = arith.constant 0 : index
    %c0_8 = arith.constant 0 : index
    %7 = vector.load %arg2[%c0_7, %c0_8] : memref<32x96xf32, #tpu.memory_space<vmem>>, vector<32x96xf32>
    %c0_9 = arith.constant 0 : index
    %c0_10 = arith.constant 0 : index
    %8 = vector.load %arg4[%c0_9, %c0_10] : memref<1x32xf32, #tpu.memory_space<vmem>>, vector<1x32xf32>
    %9 = vector.shape_cast %8 : vector<1x32xf32> to vector<1x32xf32>
    %10 = vector.broadcast %9 : vector<1x32xf32> to vector<8x32xf32>
    %cst_11 = arith.constant 0.000000e+00 : f32
    %11 = vector.broadcast %cst_11 : f32 to vector<8x32xf32>
    %c0_i32 = arith.constant 0 : i32
    %c8_i32 = arith.constant 8 : i32
    %12 = arith.muli %c0_i32, %c8_i32 : i32
    %13 = tpu.assume_multiple %12, 8 : i32
    %14 = arith.index_cast %13 : i32 to index
    %c0_12 = arith.constant 0 : index
    %15 = vector.load %arg9[%14, %c0_12] : memref<64x96xf32, #tpu.memory_space<vmem>>, vector<8x96xf32>
    %cst_13 = arith.constant dense<0.000000e+00> : vector<8x96xf32>
    %16 = tpu.matmul %11, %7, %cst_13 {dimension_numbers = #tpu.dot_dimension_numbers<[1], [0], [0], [1], [0, 0, 1, 1], [], []>} : vector<8x32xf32>, vector<32x96xf32>, vector<8x96xf32> -> vector<8x96xf32>
    %17 = vector.extract_strided_slice %15 {offsets = [0, 0], sizes = [8, 32], strides = [1, 1]} : vector<8x96xf32> to vector<8x32xf32>
    %18 = vector.extract_strided_slice %16 {offsets = [0, 0], sizes = [8, 32], strides = [1, 1]} : vector<8x96xf32> to vector<8x32xf32>
    %19 = arith.addf %17, %18 : vector<8x32xf32>
    %20 = arith.negf %19 : vector<8x32xf32>
    %21 = math.exp %20 : vector<8x32xf32>
    %cst_14 = arith.constant 1.000000e+00 : f32
    %22 = vector.broadcast %cst_14 : f32 to vector<8x32xf32>
    %23 = arith.addf %22, %21 : vector<8x32xf32>
    %24 = arith.divf %22, %23 : vector<8x32xf32>
    %25 = vector.extract_strided_slice %15 {offsets = [0, 32], sizes = [8, 32], strides = [1, 1]} : vector<8x96xf32> to vector<8x32xf32>
    %26 = vector.extract_strided_slice %16 {offsets = [0, 32], sizes = [8, 32], strides = [1, 1]} : vector<8x96xf32> to vector<8x32xf32>
    %27 = arith.addf %25, %26 : vector<8x32xf32>
    %28 = arith.negf %27 : vector<8x32xf32>
    %29 = math.exp %28 : vector<8x32xf32>
    %cst_15 = arith.constant 1.000000e+00 : f32
    %30 = vector.broadcast %cst_15 : f32 to vector<8x32xf32>
    %31 = arith.addf %30, %29 : vector<8x32xf32>
    %32 = arith.divf %30, %31 : vector<8x32xf32>
    %33 = vector.extract_strided_slice %15 {offsets = [0, 64], sizes = [8, 32], strides = [1, 1]} : vector<8x96xf32> to vector<8x32xf32>
    %34 = vector.extract_strided_slice %16 {offsets = [0, 64], sizes = [8, 32], strides = [1, 1]} : vector<8x96xf32> to vector<8x32xf32>
    %35 = arith.addf %34, %10 : vector<8x32xf32>
    %36 = arith.mulf %24, %35 : vector<8x32xf32>
    %37 = arith.addf %33, %36 : vector<8x32xf32>
    %38 = math.tanh %37 : vector<8x32xf32>
    %39 = arith.subf %11, %38 : vector<8x32xf32>
    %40 = arith.mulf %32, %39 : vector<8x32xf32>
    %41 = arith.addf %38, %40 : vector<8x32xf32>
    %42 = arith.index_cast %13 : i32 to index
    %c0_16 = arith.constant 0 : index
    %43 = vector.load %arg10[%42, %c0_16] : memref<64x32xf32, #tpu.memory_space<vmem>>, vector<8x32xf32>
    tpu.vector_store %arg10[%42, %c0_16], %41 {strides = array<i32>} : memref<64x32xf32, #tpu.memory_space<vmem>>, vector<8x32xf32>,
    %c1_i32 = arith.constant 1 : i32
    %c8_i32_17 = arith.constant 8 : i32
    %44 = arith.muli %c1_i32, %c8_i32_17 : i32
    %45 = tpu.assume_multiple %44, 8 : i32
    %46 = arith.index_cast %45 : i32 to index
    %c0_18 = arith.constant 0 : index
    %47 = vector.load %arg9[%46, %c0_18] : memref<64x96xf32, #tpu.memory_space<vmem>>, vector<8x96xf32>
    %cst_19 = arith.constant dense<0.000000e+00> : vector<8x96xf32>
    %48 = tpu.matmul %41, %7, %cst_19 {dimension_numbers = #tpu.dot_dimension_numbers<[1], [0], [0], [1], [0, 0, 1, 1], [], []>} : vector<8x32xf32>, vector<32x96xf32>, vector<8x96xf32> -> vector<8x96xf32>
    %49 = vector.extract_strided_slice %47 {offsets = [0, 0], sizes = [8, 32], strides = [1, 1]} : vector<8x96xf32> to vector<8x32xf32>
    %50 = vector.extract_strided_slice %48 {offsets = [0, 0], sizes = [8, 32], strides = [1, 1]} : vector<8x96xf32> to vector<8x32xf32>
    %51 = arith.addf %49, %50 : vector<8x32xf32>
    %52 = arith.negf %51 : vector<8x32xf32>
    %53 = math.exp %52 : vector<8x32xf32>
    %cst_20 = arith.constant 1.000000e+00 : f32
    %54 = vector.broadcast %cst_20 : f32 to vector<8x32xf32>
    %55 = arith.addf %54, %53 : vector<8x32xf32>
    %56 = arith.divf %54, %55 : vector<8x32xf32>
    %57 = vector.extract_strided_slice %47 {offsets = [0, 32], sizes = [8, 32], strides = [1, 1]} : vector<8x96xf32> to vector<8x32xf32>
    %58 = vector.extract_strided_slice %48 {offsets = [0, 32], sizes = [8, 32], strides = [1, 1]} : vector<8x96xf32> to vector<8x32xf32>
    %59 = arith.addf %57, %58 : vector<8x32xf32>
    %60 = arith.negf %59 : vector<8x32xf32>
    %61 = math.exp %60 : vector<8x32xf32>
    %cst_21 = arith.constant 1.000000e+00 : f32
    %62 = vector.broadcast %cst_21 : f32 to vector<8x32xf32>
    %63 = arith.addf %62, %61 : vector<8x32xf32>
    %64 = arith.divf %62, %63 : vector<8x32xf32>
    %65 = vector.extract_strided_slice %47 {offsets = [0, 64], sizes = [8, 32], strides = [1, 1]} : vector<8x96xf32> to vector<8x32xf32>
    %66 = vector.extract_strided_slice %48 {offsets = [0, 64], sizes = [8, 32], strides = [1, 1]} : vector<8x96xf32> to vector<8x32xf32>
    %67 = arith.addf %66, %10 : vector<8x32xf32>
    %68 = arith.mulf %56, %67 : vector<8x32xf32>
    %69 = arith.addf %65, %68 : vector<8x32xf32>
    %70 = math.tanh %69 : vector<8x32xf32>
    %71 = arith.subf %41, %70 : vector<8x32xf32>
    %72 = arith.mulf %64, %71 : vector<8x32xf32>
    %73 = arith.addf %70, %72 : vector<8x32xf32>
    %74 = arith.index_cast %45 : i32 to index
    %c0_22 = arith.constant 0 : index
    %75 = vector.load %arg10[%74, %c0_22] : memref<64x32xf32, #tpu.memory_space<vmem>>, vector<8x32xf32>
    tpu.vector_store %arg10[%74, %c0_22], %73 {strides = array<i32>} : memref<64x32xf32, #tpu.memory_space<vmem>>, vector<8x32xf32>,
    %c2_i32 = arith.constant 2 : i32
    %c8_i32_23 = arith.constant 8 : i32
    %76 = arith.muli %c2_i32, %c8_i32_23 : i32
    %77 = tpu.assume_multiple %76, 8 : i32
    %78 = arith.index_cast %77 : i32 to index
    %c0_24 = arith.constant 0 : index
    %79 = vector.load %arg9[%78, %c0_24] : memref<64x96xf32, #tpu.memory_space<vmem>>, vector<8x96xf32>
    %cst_25 = arith.constant dense<0.000000e+00> : vector<8x96xf32>
    %80 = tpu.matmul %73, %7, %cst_25 {dimension_numbers = #tpu.dot_dimension_numbers<[1], [0], [0], [1], [0, 0, 1, 1], [], []>} : vector<8x32xf32>, vector<32x96xf32>, vector<8x96xf32> -> vector<8x96xf32>
    %81 = vector.extract_strided_slice %79 {offsets = [0, 0], sizes = [8, 32], strides = [1, 1]} : vector<8x96xf32> to vector<8x32xf32>
    %82 = vector.extract_strided_slice %80 {offsets = [0, 0], sizes = [8, 32], strides = [1, 1]} : vector<8x96xf32> to vector<8x32xf32>
    %83 = arith.addf %81, %82 : vector<8x32xf32>
    %84 = arith.negf %83 : vector<8x32xf32>
    %85 = math.exp %84 : vector<8x32xf32>
    %cst_26 = arith.constant 1.000000e+00 : f32
    %86 = vector.broadcast %cst_26 : f32 to vector<8x32xf32>
    %87 = arith.addf %86, %85 : vector<8x32xf32>
    %88 = arith.divf %86, %87 : vector<8x32xf32>
    %89 = vector.extract_strided_slice %79 {offsets = [0, 32], sizes = [8, 32], strides = [1, 1]} : vector<8x96xf32> to vector<8x32xf32>
    %90 = vector.extract_strided_slice %80 {offsets = [0, 32], sizes = [8, 32], strides = [1, 1]} : vector<8x96xf32> to vector<8x32xf32>
    %91 = arith.addf %89, %90 : vector<8x32xf32>
    %92 = arith.negf %91 : vector<8x32xf32>
    %93 = math.exp %92 : vector<8x32xf32>
    %cst_27 = arith.constant 1.000000e+00 : f32
    %94 = vector.broadcast %cst_27 : f32 to vector<8x32xf32>
    %95 = arith.addf %94, %93 : vector<8x32xf32>
    %96 = arith.divf %94, %95 : vector<8x32xf32>
    %97 = vector.extract_strided_slice %79 {offsets = [0, 64], sizes = [8, 32], strides = [1, 1]} : vector<8x96xf32> to vector<8x32xf32>
    %98 = vector.extract_strided_slice %80 {offsets = [0, 64], sizes = [8, 32], strides = [1, 1]} : vector<8x96xf32> to vector<8x32xf32>
    %99 = arith.addf %98, %10 : vector<8x32xf32>
    %100 = arith.mulf %88, %99 : vector<8x32xf32>
    %101 = arith.addf %97, %100 : vector<8x32xf32>
    %102 = math.tanh %101 : vector<8x32xf32>
    %103 = arith.subf %73, %102 : vector<8x32xf32>
    %104 = arith.mulf %96, %103 : vector<8x32xf32>
    %105 = arith.addf %102, %104 : vector<8x32xf32>
    %106 = arith.index_cast %77 : i32 to index
    %c0_28 = arith.constant 0 : index
    %107 = vector.load %arg10[%106, %c0_28] : memref<64x32xf32, #tpu.memory_space<vmem>>, vector<8x32xf32>
    tpu.vector_store %arg10[%106, %c0_28], %105 {strides = array<i32>} : memref<64x32xf32, #tpu.memory_space<vmem>>, vector<8x32xf32>,
    %c3_i32 = arith.constant 3 : i32
    %c8_i32_29 = arith.constant 8 : i32
    %108 = arith.muli %c3_i32, %c8_i32_29 : i32
    %109 = tpu.assume_multiple %108, 8 : i32
    %110 = arith.index_cast %109 : i32 to index
    %c0_30 = arith.constant 0 : index
    %111 = vector.load %arg9[%110, %c0_30] : memref<64x96xf32, #tpu.memory_space<vmem>>, vector<8x96xf32>
    %cst_31 = arith.constant dense<0.000000e+00> : vector<8x96xf32>
    %112 = tpu.matmul %105, %7, %cst_31 {dimension_numbers = #tpu.dot_dimension_numbers<[1], [0], [0], [1], [0, 0, 1, 1], [], []>} : vector<8x32xf32>, vector<32x96xf32>, vector<8x96xf32> -> vector<8x96xf32>
    %113 = vector.extract_strided_slice %111 {offsets = [0, 0], sizes = [8, 32], strides = [1, 1]} : vector<8x96xf32> to vector<8x32xf32>
    %114 = vector.extract_strided_slice %112 {offsets = [0, 0], sizes = [8, 32], strides = [1, 1]} : vector<8x96xf32> to vector<8x32xf32>
    %115 = arith.addf %113, %114 : vector<8x32xf32>
    %116 = arith.negf %115 : vector<8x32xf32>
    %117 = math.exp %116 : vector<8x32xf32>
    %cst_32 = arith.constant 1.000000e+00 : f32
    %118 = vector.broadcast %cst_32 : f32 to vector<8x32xf32>
    %119 = arith.addf %118, %117 : vector<8x32xf32>
    %120 = arith.divf %118, %119 : vector<8x32xf32>
    %121 = vector.extract_strided_slice %111 {offsets = [0, 32], sizes = [8, 32], strides = [1, 1]} : vector<8x96xf32> to vector<8x32xf32>
    %122 = vector.extract_strided_slice %112 {offsets = [0, 32], sizes = [8, 32], strides = [1, 1]} : vector<8x96xf32> to vector<8x32xf32>
    %123 = arith.addf %121, %122 : vector<8x32xf32>
    %124 = arith.negf %123 : vector<8x32xf32>
    %125 = math.exp %124 : vector<8x32xf32>
    %cst_33 = arith.constant 1.000000e+00 : f32
    %126 = vector.broadcast %cst_33 : f32 to vector<8x32xf32>
    %127 = arith.addf %126, %125 : vector<8x32xf32>
    %128 = arith.divf %126, %127 : vector<8x32xf32>
    %129 = vector.extract_strided_slice %111 {offsets = [0, 64], sizes = [8, 32], strides = [1, 1]} : vector<8x96xf32> to vector<8x32xf32>
    %130 = vector.extract_strided_slice %112 {offsets = [0, 64], sizes = [8, 32], strides = [1, 1]} : vector<8x96xf32> to vector<8x32xf32>
    %131 = arith.addf %130, %10 : vector<8x32xf32>
    %132 = arith.mulf %120, %131 : vector<8x32xf32>
    %133 = arith.addf %129, %132 : vector<8x32xf32>
    %134 = math.tanh %133 : vector<8x32xf32>
    %135 = arith.subf %105, %134 : vector<8x32xf32>
    %136 = arith.mulf %128, %135 : vector<8x32xf32>
    %137 = arith.addf %134, %136 : vector<8x32xf32>
    %138 = arith.index_cast %109 : i32 to index
    %c0_34 = arith.constant 0 : index
    %139 = vector.load %arg10[%138, %c0_34] : memref<64x32xf32, #tpu.memory_space<vmem>>, vector<8x32xf32>
    tpu.vector_store %arg10[%138, %c0_34], %137 {strides = array<i32>} : memref<64x32xf32, #tpu.memory_space<vmem>>, vector<8x32xf32>,
    %c4_i32 = arith.constant 4 : i32
    %c8_i32_35 = arith.constant 8 : i32
    %140 = arith.muli %c4_i32, %c8_i32_35 : i32
    %141 = tpu.assume_multiple %140, 8 : i32
    %142 = arith.index_cast %141 : i32 to index
    %c0_36 = arith.constant 0 : index
    %143 = vector.load %arg9[%142, %c0_36] : memref<64x96xf32, #tpu.memory_space<vmem>>, vector<8x96xf32>
    %cst_37 = arith.constant dense<0.000000e+00> : vector<8x96xf32>
    %144 = tpu.matmul %137, %7, %cst_37 {dimension_numbers = #tpu.dot_dimension_numbers<[1], [0], [0], [1], [0, 0, 1, 1], [], []>} : vector<8x32xf32>, vector<32x96xf32>, vector<8x96xf32> -> vector<8x96xf32>
    %145 = vector.extract_strided_slice %143 {offsets = [0, 0], sizes = [8, 32], strides = [1, 1]} : vector<8x96xf32> to vector<8x32xf32>
    %146 = vector.extract_strided_slice %144 {offsets = [0, 0], sizes = [8, 32], strides = [1, 1]} : vector<8x96xf32> to vector<8x32xf32>
    %147 = arith.addf %145, %146 : vector<8x32xf32>
    %148 = arith.negf %147 : vector<8x32xf32>
    %149 = math.exp %148 : vector<8x32xf32>
    %cst_38 = arith.constant 1.000000e+00 : f32
    %150 = vector.broadcast %cst_38 : f32 to vector<8x32xf32>
    %151 = arith.addf %150, %149 : vector<8x32xf32>
    %152 = arith.divf %150, %151 : vector<8x32xf32>
    %153 = vector.extract_strided_slice %143 {offsets = [0, 32], sizes = [8, 32], strides = [1, 1]} : vector<8x96xf32> to vector<8x32xf32>
    %154 = vector.extract_strided_slice %144 {offsets = [0, 32], sizes = [8, 32], strides = [1, 1]} : vector<8x96xf32> to vector<8x32xf32>
    %155 = arith.addf %153, %154 : vector<8x32xf32>
    %156 = arith.negf %155 : vector<8x32xf32>
    %157 = math.exp %156 : vector<8x32xf32>
    %cst_39 = arith.constant 1.000000e+00 : f32
    %158 = vector.broadcast %cst_39 : f32 to vector<8x32xf32>
    %159 = arith.addf %158, %157 : vector<8x32xf32>
    %160 = arith.divf %158, %159 : vector<8x32xf32>
    %161 = vector.extract_strided_slice %143 {offsets = [0, 64], sizes = [8, 32], strides = [1, 1]} : vector<8x96xf32> to vector<8x32xf32>
    %162 = vector.extract_strided_slice %144 {offsets = [0, 64], sizes = [8, 32], strides = [1, 1]} : vector<8x96xf32> to vector<8x32xf32>
    %163 = arith.addf %162, %10 : vector<8x32xf32>
    %164 = arith.mulf %152, %163 : vector<8x32xf32>
    %165 = arith.addf %161, %164 : vector<8x32xf32>
    %166 = math.tanh %165 : vector<8x32xf32>
    %167 = arith.subf %137, %166 : vector<8x32xf32>
    %168 = arith.mulf %160, %167 : vector<8x32xf32>
    %169 = arith.addf %166, %168 : vector<8x32xf32>
    %170 = arith.index_cast %141 : i32 to index
    %c0_40 = arith.constant 0 : index
    %171 = vector.load %arg10[%170, %c0_40] : memref<64x32xf32, #tpu.memory_space<vmem>>, vector<8x32xf32>
    tpu.vector_store %arg10[%170, %c0_40], %169 {strides = array<i32>} : memref<64x32xf32, #tpu.memory_space<vmem>>, vector<8x32xf32>,
    %c5_i32 = arith.constant 5 : i32
    %c8_i32_41 = arith.constant 8 : i32
    %172 = arith.muli %c5_i32, %c8_i32_41 : i32
    %173 = tpu.assume_multiple %172, 8 : i32
    %174 = arith.index_cast %173 : i32 to index
    %c0_42 = arith.constant 0 : index
    %175 = vector.load %arg9[%174, %c0_42] : memref<64x96xf32, #tpu.memory_space<vmem>>, vector<8x96xf32>
    %cst_43 = arith.constant dense<0.000000e+00> : vector<8x96xf32>
    %176 = tpu.matmul %169, %7, %cst_43 {dimension_numbers = #tpu.dot_dimension_numbers<[1], [0], [0], [1], [0, 0, 1, 1], [], []>} : vector<8x32xf32>, vector<32x96xf32>, vector<8x96xf32> -> vector<8x96xf32>
    %177 = vector.extract_strided_slice %175 {offsets = [0, 0], sizes = [8, 32], strides = [1, 1]} : vector<8x96xf32> to vector<8x32xf32>
    %178 = vector.extract_strided_slice %176 {offsets = [0, 0], sizes = [8, 32], strides = [1, 1]} : vector<8x96xf32> to vector<8x32xf32>
    %179 = arith.addf %177, %178 : vector<8x32xf32>
    %180 = arith.negf %179 : vector<8x32xf32>
    %181 = math.exp %180 : vector<8x32xf32>
    %cst_44 = arith.constant 1.000000e+00 : f32
    %182 = vector.broadcast %cst_44 : f32 to vector<8x32xf32>
    %183 = arith.addf %182, %181 : vector<8x32xf32>
    %184 = arith.divf %182, %183 : vector<8x32xf32>
    %185 = vector.extract_strided_slice %175 {offsets = [0, 32], sizes = [8, 32], strides = [1, 1]} : vector<8x96xf32> to vector<8x32xf32>
    %186 = vector.extract_strided_slice %176 {offsets = [0, 32], sizes = [8, 32], strides = [1, 1]} : vector<8x96xf32> to vector<8x32xf32>
    %187 = arith.addf %185, %186 : vector<8x32xf32>
    %188 = arith.negf %187 : vector<8x32xf32>
    %189 = math.exp %188 : vector<8x32xf32>
    %cst_45 = arith.constant 1.000000e+00 : f32
    %190 = vector.broadcast %cst_45 : f32 to vector<8x32xf32>
    %191 = arith.addf %190, %189 : vector<8x32xf32>
    %192 = arith.divf %190, %191 : vector<8x32xf32>
    %193 = vector.extract_strided_slice %175 {offsets = [0, 64], sizes = [8, 32], strides = [1, 1]} : vector<8x96xf32> to vector<8x32xf32>
    %194 = vector.extract_strided_slice %176 {offsets = [0, 64], sizes = [8, 32], strides = [1, 1]} : vector<8x96xf32> to vector<8x32xf32>
    %195 = arith.addf %194, %10 : vector<8x32xf32>
    %196 = arith.mulf %184, %195 : vector<8x32xf32>
    %197 = arith.addf %193, %196 : vector<8x32xf32>
    %198 = math.tanh %197 : vector<8x32xf32>
    %199 = arith.subf %169, %198 : vector<8x32xf32>
    %200 = arith.mulf %192, %199 : vector<8x32xf32>
    %201 = arith.addf %198, %200 : vector<8x32xf32>
    %202 = arith.index_cast %173 : i32 to index
    %c0_46 = arith.constant 0 : index
    %203 = vector.load %arg10[%202, %c0_46] : memref<64x32xf32, #tpu.memory_space<vmem>>, vector<8x32xf32>
    tpu.vector_store %arg10[%202, %c0_46], %201 {strides = array<i32>} : memref<64x32xf32, #tpu.memory_space<vmem>>, vector<8x32xf32>,
    %c6_i32 = arith.constant 6 : i32
    %c8_i32_47 = arith.constant 8 : i32
    %204 = arith.muli %c6_i32, %c8_i32_47 : i32
    %205 = tpu.assume_multiple %204, 8 : i32
    %206 = arith.index_cast %205 : i32 to index
    %c0_48 = arith.constant 0 : index
    %207 = vector.load %arg9[%206, %c0_48] : memref<64x96xf32, #tpu.memory_space<vmem>>, vector<8x96xf32>
    %cst_49 = arith.constant dense<0.000000e+00> : vector<8x96xf32>
    %208 = tpu.matmul %201, %7, %cst_49 {dimension_numbers = #tpu.dot_dimension_numbers<[1], [0], [0], [1], [0, 0, 1, 1], [], []>} : vector<8x32xf32>, vector<32x96xf32>, vector<8x96xf32> -> vector<8x96xf32>
    %209 = vector.extract_strided_slice %207 {offsets = [0, 0], sizes = [8, 32], strides = [1, 1]} : vector<8x96xf32> to vector<8x32xf32>
    %210 = vector.extract_strided_slice %208 {offsets = [0, 0], sizes = [8, 32], strides = [1, 1]} : vector<8x96xf32> to vector<8x32xf32>
    %211 = arith.addf %209, %210 : vector<8x32xf32>
    %212 = arith.negf %211 : vector<8x32xf32>
    %213 = math.exp %212 : vector<8x32xf32>
    %cst_50 = arith.constant 1.000000e+00 : f32
    %214 = vector.broadcast %cst_50 : f32 to vector<8x32xf32>
    %215 = arith.addf %214, %213 : vector<8x32xf32>
    %216 = arith.divf %214, %215 : vector<8x32xf32>
    %217 = vector.extract_strided_slice %207 {offsets = [0, 32], sizes = [8, 32], strides = [1, 1]} : vector<8x96xf32> to vector<8x32xf32>
    %218 = vector.extract_strided_slice %208 {offsets = [0, 32], sizes = [8, 32], strides = [1, 1]} : vector<8x96xf32> to vector<8x32xf32>
    %219 = arith.addf %217, %218 : vector<8x32xf32>
    %220 = arith.negf %219 : vector<8x32xf32>
    %221 = math.exp %220 : vector<8x32xf32>
    %cst_51 = arith.constant 1.000000e+00 : f32
    %222 = vector.broadcast %cst_51 : f32 to vector<8x32xf32>
    %223 = arith.addf %222, %221 : vector<8x32xf32>
    %224 = arith.divf %222, %223 : vector<8x32xf32>
    %225 = vector.extract_strided_slice %207 {offsets = [0, 64], sizes = [8, 32], strides = [1, 1]} : vector<8x96xf32> to vector<8x32xf32>
    %226 = vector.extract_strided_slice %208 {offsets = [0, 64], sizes = [8, 32], strides = [1, 1]} : vector<8x96xf32> to vector<8x32xf32>
    %227 = arith.addf %226, %10 : vector<8x32xf32>
    %228 = arith.mulf %216, %227 : vector<8x32xf32>
    %229 = arith.addf %225, %228 : vector<8x32xf32>
    %230 = math.tanh %229 : vector<8x32xf32>
    %231 = arith.subf %201, %230 : vector<8x32xf32>
    %232 = arith.mulf %224, %231 : vector<8x32xf32>
    %233 = arith.addf %230, %232 : vector<8x32xf32>
    %234 = arith.index_cast %205 : i32 to index
    %c0_52 = arith.constant 0 : index
    %235 = vector.load %arg10[%234, %c0_52] : memref<64x32xf32, #tpu.memory_space<vmem>>, vector<8x32xf32>
    tpu.vector_store %arg10[%234, %c0_52], %233 {strides = array<i32>} : memref<64x32xf32, #tpu.memory_space<vmem>>, vector<8x32xf32>,
    %c7_i32 = arith.constant 7 : i32
    %c8_i32_53 = arith.constant 8 : i32
    %236 = arith.muli %c7_i32, %c8_i32_53 : i32
    %237 = tpu.assume_multiple %236, 8 : i32
    %238 = arith.index_cast %237 : i32 to index
    %c0_54 = arith.constant 0 : index
    %239 = vector.load %arg9[%238, %c0_54] : memref<64x96xf32, #tpu.memory_space<vmem>>, vector<8x96xf32>
    %cst_55 = arith.constant dense<0.000000e+00> : vector<8x96xf32>
    %240 = tpu.matmul %233, %7, %cst_55 {dimension_numbers = #tpu.dot_dimension_numbers<[1], [0], [0], [1], [0, 0, 1, 1], [], []>} : vector<8x32xf32>, vector<32x96xf32>, vector<8x96xf32> -> vector<8x96xf32>
    %241 = vector.extract_strided_slice %239 {offsets = [0, 0], sizes = [8, 32], strides = [1, 1]} : vector<8x96xf32> to vector<8x32xf32>
    %242 = vector.extract_strided_slice %240 {offsets = [0, 0], sizes = [8, 32], strides = [1, 1]} : vector<8x96xf32> to vector<8x32xf32>
    %243 = arith.addf %241, %242 : vector<8x32xf32>
    %244 = arith.negf %243 : vector<8x32xf32>
    %245 = math.exp %244 : vector<8x32xf32>
    %cst_56 = arith.constant 1.000000e+00 : f32
    %246 = vector.broadcast %cst_56 : f32 to vector<8x32xf32>
    %247 = arith.addf %246, %245 : vector<8x32xf32>
    %248 = arith.divf %246, %247 : vector<8x32xf32>
    %249 = vector.extract_strided_slice %239 {offsets = [0, 32], sizes = [8, 32], strides = [1, 1]} : vector<8x96xf32> to vector<8x32xf32>
    %250 = vector.extract_strided_slice %240 {offsets = [0, 32], sizes = [8, 32], strides = [1, 1]} : vector<8x96xf32> to vector<8x32xf32>
    %251 = arith.addf %249, %250 : vector<8x32xf32>
    %252 = arith.negf %251 : vector<8x32xf32>
    %253 = math.exp %252 : vector<8x32xf32>
    %cst_57 = arith.constant 1.000000e+00 : f32
    %254 = vector.broadcast %cst_57 : f32 to vector<8x32xf32>
    %255 = arith.addf %254, %253 : vector<8x32xf32>
    %256 = arith.divf %254, %255 : vector<8x32xf32>
    %257 = vector.extract_strided_slice %239 {offsets = [0, 64], sizes = [8, 32], strides = [1, 1]} : vector<8x96xf32> to vector<8x32xf32>
    %258 = vector.extract_strided_slice %240 {offsets = [0, 64], sizes = [8, 32], strides = [1, 1]} : vector<8x96xf32> to vector<8x32xf32>
    %259 = arith.addf %258, %10 : vector<8x32xf32>
    %260 = arith.mulf %248, %259 : vector<8x32xf32>
    %261 = arith.addf %257, %260 : vector<8x32xf32>
    %262 = math.tanh %261 : vector<8x32xf32>
    %263 = arith.subf %233, %262 : vector<8x32xf32>
    %264 = arith.mulf %256, %263 : vector<8x32xf32>
    %265 = arith.addf %262, %264 : vector<8x32xf32>
    %266 = arith.index_cast %237 : i32 to index
    %c0_58 = arith.constant 0 : index
    %267 = vector.load %arg10[%266, %c0_58] : memref<64x32xf32, #tpu.memory_space<vmem>>, vector<8x32xf32>
    tpu.vector_store %arg10[%266, %c0_58], %265 {strides = array<i32>} : memref<64x32xf32, #tpu.memory_space<vmem>>, vector<8x32xf32>,
    %c8_i32_59 = arith.constant 8 : i32
    %c0_60 = arith.constant 0 : index
    %c0_61 = arith.constant 0 : index
    %268 = vector.load %arg7[%c0_60, %c0_61] : memref<64x1xf32, #tpu.memory_space<vmem>>, vector<64x1xf32>
    %cst_62 = arith.constant 0.000000e+00 : f32
    %269 = vector.broadcast %cst_62 : f32 to vector<64x1xf32>
    %270 = arith.cmpf ogt, %268, %269 : vector<64x1xf32>
    %c0_63 = arith.constant 0 : index
    %c0_64 = arith.constant 0 : index
    %271 = vector.load %arg10[%c0_63, %c0_64] : memref<64x32xf32, #tpu.memory_space<vmem>>, vector<64x32xf32>
    %cst_65 = arith.constant 0.000000e+00 : f32
    %272 = vector.shape_cast %270 : vector<64x1xi1> to vector<64x1xi1>
    %273 = vector.broadcast %272 : vector<64x1xi1> to vector<64x32xi1>
    %274 = vector.broadcast %cst_65 : f32 to vector<64x32xf32>
    %275 = arith.select %273, %271, %274 : vector<64x32xi1>, vector<64x32xf32>
    %c0_66 = arith.constant 0 : index
    %c0_67 = arith.constant 0 : index
    %276 = vector.load %arg5[%c0_66, %c0_67] : memref<32x128xf32, #tpu.memory_space<vmem>>, vector<32x128xf32>
    %cst_68 = arith.constant dense<0.000000e+00> : vector<64x128xf32>
    %277 = tpu.matmul %275, %276, %cst_68 {dimension_numbers = #tpu.dot_dimension_numbers<[1], [0], [0], [1], [0, 0, 1, 1], [], []>} : vector<64x32xf32>, vector<32x128xf32>, vector<64x128xf32> -> vector<64x128xf32>
    %c0_69 = arith.constant 0 : index
    %c0_70 = arith.constant 0 : index
    %278 = vector.load %arg6[%c0_69, %c0_70] : memref<1x128xf32, #tpu.memory_space<vmem>>, vector<1x128xf32>
    %279 = vector.broadcast %278 : vector<1x128xf32> to vector<64x128xf32>
    %280 = arith.addf %277, %279 : vector<64x128xf32>
    %281 = tpu.iota {dimensions = array<i32: 1>} : vector<64x128xi32>
    %c7_i32_71 = arith.constant 7 : i32
    %282 = vector.broadcast %c7_i32_71 : i32 to vector<64x128xi32>
    %283 = arith.cmpi sge, %281, %282 : vector<64x128xi32>
    %c9_i32 = arith.constant 9 : i32
    %284 = vector.broadcast %c9_i32 : i32 to vector<64x128xi32>
    %285 = arith.cmpi slt, %281, %284 : vector<64x128xi32>
    %286 = arith.andi %283, %285 : vector<64x128xi1>
    %287 = arith.negf %280 : vector<64x128xf32>
    %288 = math.exp %287 : vector<64x128xf32>
    %cst_72 = arith.constant 1.000000e+00 : f32
    %289 = vector.broadcast %cst_72 : f32 to vector<64x128xf32>
    %290 = arith.addf %289, %288 : vector<64x128xf32>
    %291 = arith.divf %289, %290 : vector<64x128xf32>
    %292 = arith.select %286, %291, %280 : vector<64x128xi1>, vector<64x128xf32>
    %c9_i32_73 = arith.constant 9 : i32
    %293 = vector.broadcast %c9_i32_73 : i32 to vector<64x128xi32>
    %294 = arith.cmpi sge, %281, %293 : vector<64x128xi32>
    %cst_74 = arith.constant 0.000000e+00 : f32
    %295 = vector.broadcast %cst_74 : f32 to vector<64x128xf32>
    %296 = arith.maximumf %292, %295 : vector<64x128xf32>
    %297 = arith.select %294, %296, %292 : vector<64x128xi1>, vector<64x128xf32>
    %c0_75 = arith.constant 0 : index
    %c0_76 = arith.constant 0 : index
    %298 = vector.load %arg11[%c0_75, %c0_76] : memref<64x128xf32, #tpu.memory_space<vmem>>, vector<64x128xf32>
    tpu.vector_store %arg11[%c0_75, %c0_76], %297 {strides = array<i32>} : memref<64x128xf32, #tpu.memory_space<vmem>>, vector<64x128xf32>,
    %c0_77 = arith.constant 0 : index
    %c0_78 = arith.constant 0 : index
    %299 = tpu.strided_load %arg11[%c0_77, %c0_78] {strides = array<i32: 8, 1>} : memref<64x128xf32, #tpu.memory_space<vmem>>, vector<8x128xf32>
    %c0_79 = arith.constant 0 : index
    %c0_80 = arith.constant 0 : index
    %c0_81 = arith.constant 0 : index
    %300 = vector.load %arg8[%c0_79, %c0_80, %c0_81] : memref<4x8x128xf32, #tpu.memory_space<vmem>>, vector<1x8x128xf32>
    %301 = vector.shape_cast %300 : vector<1x8x128xf32> to vector<8x128xf32>
    %302 = vector.shape_cast %299 : vector<8x128xf32> to vector<1x8x128xf32>
    tpu.vector_store %arg8[%c0_79, %c0_80, %c0_81], %302 {strides = array<i32>} : memref<4x8x128xf32, #tpu.memory_space<vmem>>, vector<1x8x128xf32>,
    %c1 = arith.constant 1 : index
    %c0_82 = arith.constant 0 : index
    %303 = tpu.strided_load %arg11[%c1, %c0_82] {strides = array<i32: 8, 1>} : memref<64x128xf32, #tpu.memory_space<vmem>>, vector<8x128xf32>
    %c1_83 = arith.constant 1 : index
    %c0_84 = arith.constant 0 : index
    %c0_85 = arith.constant 0 : index
    %304 = vector.load %arg8[%c1_83, %c0_84, %c0_85] : memref<4x8x128xf32, #tpu.memory_space<vmem>>, vector<1x8x128xf32>
    %305 = vector.shape_cast %304 : vector<1x8x128xf32> to vector<8x128xf32>
    %306 = vector.shape_cast %303 : vector<8x128xf32> to vector<1x8x128xf32>
    tpu.vector_store %arg8[%c1_83, %c0_84, %c0_85], %306 {strides = array<i32>} : memref<4x8x128xf32, #tpu.memory_space<vmem>>, vector<1x8x128xf32>,
    %c2 = arith.constant 2 : index
    %c0_86 = arith.constant 0 : index
    %307 = tpu.strided_load %arg11[%c2, %c0_86] {strides = array<i32: 8, 1>} : memref<64x128xf32, #tpu.memory_space<vmem>>, vector<8x128xf32>
    %c2_87 = arith.constant 2 : index
    %c0_88 = arith.constant 0 : index
    %c0_89 = arith.constant 0 : index
    %308 = vector.load %arg8[%c2_87, %c0_88, %c0_89] : memref<4x8x128xf32, #tpu.memory_space<vmem>>, vector<1x8x128xf32>
    %309 = vector.shape_cast %308 : vector<1x8x128xf32> to vector<8x128xf32>
    %310 = vector.shape_cast %307 : vector<8x128xf32> to vector<1x8x128xf32>
    tpu.vector_store %arg8[%c2_87, %c0_88, %c0_89], %310 {strides = array<i32>} : memref<4x8x128xf32, #tpu.memory_space<vmem>>, vector<1x8x128xf32>,
    %c3 = arith.constant 3 : index
    %c0_90 = arith.constant 0 : index
    %311 = tpu.strided_load %arg11[%c3, %c0_90] {strides = array<i32: 8, 1>} : memref<64x128xf32, #tpu.memory_space<vmem>>, vector<8x128xf32>
    %c3_91 = arith.constant 3 : index
    %c0_92 = arith.constant 0 : index
    %c0_93 = arith.constant 0 : index
    %312 = vector.load %arg8[%c3_91, %c0_92, %c0_93] : memref<4x8x128xf32, #tpu.memory_space<vmem>>, vector<1x8x128xf32>
    %313 = vector.shape_cast %312 : vector<1x8x128xf32> to vector<8x128xf32>
    %314 = vector.shape_cast %311 : vector<8x128xf32> to vector<1x8x128xf32>
    tpu.vector_store %arg8[%c3_91, %c0_92, %c0_93], %314 {strides = array<i32>} : memref<4x8x128xf32, #tpu.memory_space<vmem>>, vector<1x8x128xf32>,
    return
  }
}

</mosaic_0001>

<bundles_post_ra>
// kernel: tpu_custom_call.1
= control target key start
LH: loop header
LB: loop body
LE: loop exit
PB: predicated region body
PF: predicated region fallthrough
CT: control target
= control target key end

     0   :  { %vm44_vm0 = vcmask 130048   ;;  %s1606_s0 = inlined_call_operand.vmem [shape: f32[64,16], index: 0, kind: input, shape index: {}]   ;;  %s1607_s1 = inlined_call_operand.vmem [shape: f32[16,96], index: 1, kind: input, shape index: {}]   ;;  %s1608_s2 = inlined_call_operand.vmem [shape: f32[32,96], index: 2, kind: input, shape index: {}]   ;;  %s1609_s3 = inlined_call_operand.vmem [shape: f32[1,96], index: 3, kind: input, shape index: {}]   ;;  %s1610_s4 = inlined_call_operand.vmem [shape: f32[1,32], index: 4, kind: input, shape index: {}]   ;;  %s1611_s5 = inlined_call_operand.vmem [shape: f32[32,128], index: 5, kind: input, shape index: {}]   ;;  %s1612_s6 = inlined_call_operand.vmem [shape: f32[1,128], index: 6, kind: input, shape index: {}]   ;;  %s1613_s7 = inlined_call_operand.vmem [shape: f32[64,1], index: 7, kind: input, shape index: {}]   ;;  %s1614_s8 = inlined_call_operand.hbm [shape: f32[4,8,128], index: 8, kind: output, shape index: {}]  }
   0x1   :  { %v39_v0 = vld [vmem:[%s1607_s1 + $0x8] sm:$0xff]  ;;  %v38_v1 = vld [vmem:[%s1607_s1] sm:$0xff]  ;;  %v37_v2 = vld [vmem:[%s1606_s0 + $0x38] sm:$0xff] }
   0x2   :  { %1127 = vmatpush.msra.mxu2 %v39_v0  ;;  %v1318_v3 = vld [vmem:[%s1608_s2 + $0x18] sm:$0xff]  ;;  %83 = vmatpush.msra.mxu0 %v39_v0  ;;  %v30_v4 = vld [vmem:[%s1606_s0] sm:$0xff]  ;;  %v1332_v6 = vld [vmem:[%s1608_s2 + $0x10] sm:$0xff] }
   0x3   :  { %291 = vmatpush.msra.mxu3 %v1318_v3  ;;  %364 = vmatpush.msra.mxu1 %v1318_v3  ;;  %v1144_v5 = vld [vmem:[%s1610_s4] ss:$0 sm:$0xff] }
   0x4   :  { %1128 = vmatpush.msra.mxu2 %v38_v1  ;;  %84 = vmatpush.msra.mxu0 %v38_v1 }
   0x5   :  { %1095 = vmatmul.msk.f32.vlgmr.msra.gmra.mxu2 %vm44_vm0, %v37_v2  ;;  %1088 = vmatmul.msk.f32.vlgmr.msra.gmra.mxu0 %vm44_vm0, %v30_v4 }
   0x6   :  { %13 = vsyncpa [#allocation6], 0  ;;  %143 = vmatpush.msrb.mxu2 %v1318_v3  ;;  %s1253_s18 = smov 64   ;;  %v1340_v7 = vld [vmem:[%s1608_s2 + $0x8] sm:$0xff]  ;;  %292 = vmatpush.msra.mxu3 %v1332_v6  ;;  %v1348_v8 = vld [vmem:[%s1608_s2] sm:$0xff]  ;;  %v1254_v9 = vmov 0.0  }
   0x7   :  { %171 = vrot.lane.b32.xlu0 %v1144_v5, %s1253_s18  ;;  %365 = vmatpush.msra.mxu1 %v1332_v6  ;;  %v1375_v10 = vld [vmem:[%s1609_s3] ss:$0 sm:$0xff]  ;;  %vm110_vm1 = vcmask 785408   ;;  %s1255_s3 = smov 96   ;;  %s1256_s23 = smov 32   ;;  %v31_v41 = vld [vmem:[%s1606_s0 + $0x8] sm:$0xff] }
   0x8   :  { %144 = vmatpush.msrb.mxu2 %v1332_v6  ;;  %293 = vmatpush.msra.mxu3 %v1340_v7  ;;  %vm127_vm6 = vcmask 261120   ;;  %s1259_s14 = smov 128  }
   0x9   :  { %366 = vmatpush.msra.mxu1 %v1340_v7 }
   0xa   :  { %145 = vmatpush.msrb.mxu2 %v1340_v7  ;;  %294 = vmatpush.msra.mxu3 %v1348_v8 }
   0xb   :  { %367 = vmatpush.msra.mxu1 %v1348_v8 }
   0xc   :  { %146 = vmatpush.msrb.mxu2 %v1348_v8  ;;  %510 = vmatpush.msrb.mxu3 %v1318_v3 }
   0xd   :  { %147 = vmatmul.f32.vlgmr.msrb.gmra.mxu2 %v1254_v9  ;;  %583 = vmatpush.msrb.mxu1 %v1318_v3 }
   0xe   :  { %218 = vmatpush.msra.mxu2 %v1318_v3  ;;  %511 = vmatpush.msrb.mxu3 %v1332_v6 }
   0xf   :  { %584 = vmatpush.msrb.mxu1 %v1332_v6  ;;  %1089 = vmatmul.msk.f32.gmra.mxu0 %vm44_vm0, %v31_v41  ;;  %v33_v41 = vld [vmem:[%s1606_s0 + $0x18] sm:$0xff] }
  0x10   :  { %219 = vmatpush.msra.mxu2 %v1332_v6  ;;  %512 = vmatpush.msrb.mxu3 %v1340_v7 }
  0x11   :  { %585 = vmatpush.msrb.mxu1 %v1340_v7 }
  0x12   :  { %220 = vmatpush.msra.mxu2 %v1340_v7  ;;  %513 = vmatpush.msrb.mxu3 %v1348_v8 }
  0x13   :  { %586 = vmatpush.msrb.mxu1 %v1348_v8 }
  0x14   :  { %221 = vmatpush.msra.mxu2 %v1348_v8 }
  0x16   :  { %437 = vmatpush.msrb.mxu2 %v1318_v3 }
  0x18   :  { %438 = vmatpush.msrb.mxu2 %v1332_v6 }
  0x1a   :  { %439 = vmatpush.msrb.mxu2 %v1340_v7 }
  0x1c   :  { %440 = vmatpush.msrb.mxu2 %v1348_v8 }
  0x79   :  { %v1381_v15 = vpop.permute.xlu0 %171 }
  0x82   :  { %v86_v11 = vpop.f32.mrf.mxu0 }
  0x83   :  { %v87_v12 = vadd.f32 %v1375_v10, %v86_v11 }
  0x85   :  { %111 = vst.msk [vmem:[#allocation2] sm:$0xff] %vm110_vm1, %v87_v12 }
  0x88   :  { %v107_v13 = vpop.f32.mrf.mxu2 }
  0x89   :  { %v108_v14 = vadd.f32 %v1375_v10, %v107_v13 }
  0x8b   :  { %118 = vst.msk [vmem:[#allocation2 + $0x38] sm:$0xff] %vm110_vm1, %v108_v14 }
  0x8c   :  { %v126_v18 = vld [vmem:[#allocation2] sm:$0xff]  ;;  %v89_v45 = vpop.f32.mrf.mxu0 }
  0x8d   :  { %v90_v46 = vadd.f32 %v1375_v10, %v89_v45 }
  0x8f   :  { %112 = vst.msk [vmem:[#allocation2 + $0x8] sm:$0xff] %vm110_vm1, %v90_v46 }
  0x90   :  { %v148_v16 = vpop.f32.mrf.mxu2 }
  0x91   :  { %v174_v17 = vadd.f32 %v1381_v15, %v148_v16  ;;  %v151_v19 = vadd.f32 %v148_v16, %v126_v18 }
  0x93   :  { %176 = vrot.lane.b32.xlu0 %v174_v17, %s1253_s18  ;;  %v1096_v20 = vmul.f32 -1.442695, %v151_v19 }
  0x95   :  { %1147 = vpow2.f32 %v1096_v20 }
  0x96   :  { %v203_v49 = vld [vmem:[#allocation2 + $0x8] sm:$0xff] }
  0x9b   :  { %v1148_v21 = vpop.eup %1147 }
  0x9c   :  { %v155_v22 = vadd.f32 1.0, %v1148_v21 }
  0x9e   :  { %1149 = vrcp.f32 %v155_v22  ;;  %v167_v28 = vand.u32 2147483648, %v155_v22  ;;  %vm161_vm3 = vweird.f32 %v155_v22  ;;  %v165_v29 = vand.u32 2147483647, %v155_v22 }
  0xa0   :  { %v168_v31 = vor.u32 1.1754944e-38, %v167_v28  ;;  %vm166_vm5 = vcmp.eq.f32.partialorder %v165_v29, 8.507059e+37 }
  0xa4   :  { %v1150_v23 = vpop.eup %1149 }
  0xa5   :  { %v157_v24 = vmul.f32 %v1150_v23, %v155_v22  ;;  %vm162_vm2 = vweird.f32 %v1150_v23 }
  0xa6   :  { %vm163_vm4 = vmor %vm161_vm3, %vm162_vm2 }
  0xa7   :  { %v158_v25 = vsub.f32 1.0, %v157_v24 }
  0xa9   :  { %v159_v26 = vmul.f32 %v1150_v23, %v158_v25 }
  0xab   :  { %v160_v27 = vadd.f32 %v1150_v23, %v159_v26 }
  0xad   :  { %v164_v30 = vsel %vm163_vm4, %v1150_v23, %v160_v27 }
  0xae   :  { %v169_v33 = vsel %vm166_vm5, %v168_v31, %v164_v30 }
 0x105   :  { %v177_v32 = vpop.permute.xlu0 %176 }
 0x106   :  { %v179_v34 = vmul.f32 %v177_v32, %v169_v33 }
 0x108   :  { %181 = vrot.lane.b32.xlu1 %v179_v34, %s1253_s18 }
 0x17a   :  { %v182_v35 = vpop.permute.xlu1 %181 }
 0x17b   :  { %v184_v36 = vadd.f32 %v182_v35, %v126_v18 }
 0x17d   :  { %1151 = vtanh.f32 %v184_v36 }
 0x183   :  { %v1152_v37 = vpop.eup %1151 }
 0x184   :  { %v186_v38 = vsub.f32 0.0, %v1152_v37 }
 0x186   :  { %188 = vrot.lane.b32.xlu1 %v186_v38, %s1255_s3 }
 0x1f8   :  { %v189_v39 = vpop.permute.xlu1 %188 }
 0x1f9   :  { %v191_v40 = vmul.f32 %v189_v39, %v169_v33 }
 0x1fb   :  { %193 = vrot.lane.b32.xlu2 %v191_v40, %s1256_s23 }
 0x255   :  { %v194_v42 = vpop.permute.xlu2 %193 }
 0x256   :  { %v196_v43 = vadd.f32 %v1152_v37, %v194_v42 }
 0x258   :  { %198 = vrot.lane.b32.xlu2 %v196_v43, %s1253_s18 }
 0x2b2   :  { %v199_v44 = vpop.permute.xlu2 %198 }
 0x2b3   :  { %201 = vst.msk [vmem:[#allocation3] sm:$0xff] %vm127_vm6, %v199_v44  ;;  %1097 = vmatmul.msk.f32.vlgmr.msra.gmra.mxu2 %vm127_vm6, %v199_v44 }
 0x2b4   :  { %656 = vmatpush.msra.mxu2 %v1318_v3 }
 0x2b6   :  { %657 = vmatpush.msra.mxu2 %v1332_v6 }
 0x2b8   :  { %658 = vmatpush.msra.mxu2 %v1340_v7 }
 0x2ba   :  { %659 = vmatpush.msra.mxu2 %v1348_v8  ;;  %v32_v8 = vld [vmem:[%s1606_s0 + $0x10] sm:$0xff] }
 0x2bb   :  { %1090 = vmatmul.msk.f32.gmra.mxu0 %vm44_vm0, %v32_v8  ;;  %v34_v8 = vld [vmem:[%s1606_s0 + $0x20] sm:$0xff] }
 0x2c3   :  { %1091 = vmatmul.msk.f32.gmra.mxu0 %vm44_vm0, %v33_v41  ;;  %v35_v41 = vld [vmem:[%s1606_s0 + $0x28] sm:$0xff] }
 0x2cb   :  { %1092 = vmatmul.msk.f32.gmra.mxu0 %vm44_vm0, %v34_v8  ;;  %v36_v8 = vld [vmem:[%s1606_s0 + $0x30] sm:$0xff]  ;;  %s1076_s0 = sshll.u32 %s1614_s8, 4  ;;  %s1260_s8 = smov 8   ;;  %s1077_s0 = int_to_ptr.hbm [resolvable:$true] %s1076_s0 }
 0x2d3   :  { %1093 = vmatmul.msk.f32.gmra.mxu0 %vm44_vm0, %v35_v41 }
 0x2db   :  { %1094 = vmatmul.msk.f32.gmra.mxu0 %vm44_vm0, %v36_v8 }
 0x336   :  { %v223_v47 = vpop.f32.mrf.mxu2 }
 0x337   :  { %v246_v48 = vadd.f32 %v223_v47, %v1381_v15  ;;  %v226_v50 = vadd.f32 %v223_v47, %v203_v49 }
 0x338   :  { %v92_v12 = vpop.f32.mrf.mxu0 }
 0x339   :  { %248 = vrot.lane.b32.xlu0 %v246_v48, %s1253_s18  ;;  %v1098_v51 = vmul.f32 -1.442695, %v226_v50  ;;  %v93_v13 = vadd.f32 %v1375_v10, %v92_v12 }
 0x33b   :  { %1153 = vpow2.f32 %v1098_v51  ;;  %113 = vst.msk [vmem:[#allocation2 + $0x10] sm:$0xff] %vm110_vm1, %v93_v13 }
 0x340   :  { %v95_v44 = vpop.f32.mrf.mxu0 }
 0x341   :  { %v1154_v52 = vpop.eup %1153  ;;  %v96_v45 = vadd.f32 %v1375_v10, %v95_v44 }
 0x342   :  { %v230_v53 = vadd.f32 1.0, %v1154_v52  ;;  %v276_v18 = vld [vmem:[#allocation2 + $0x10] sm:$0xff] }
 0x343   :  { %114 = vst.msk [vmem:[#allocation2 + $0x18] sm:$0xff] %vm110_vm1, %v96_v45 }
 0x344   :  { %1155 = vrcp.f32 %v230_v53  ;;  %v242_v59 = vand.u32 2147483648, %v230_v53  ;;  %vm236_vm8 = vweird.f32 %v230_v53  ;;  %v240_v60 = vand.u32 2147483647, %v230_v53 }
 0x346   :  { %v243_v62 = vor.u32 1.1754944e-38, %v242_v59  ;;  %vm241_vm10 = vcmp.eq.f32.partialorder %v240_v60, 8.507059e+37 }
 0x348   :  { %v98_v13 = vpop.f32.mrf.mxu0 }
 0x34a   :  { %v1156_v54 = vpop.eup %1155 }
 0x34b   :  { %v232_v55 = vmul.f32 %v1156_v54, %v230_v53  ;;  %vm237_vm7 = vweird.f32 %v1156_v54 }
 0x34c   :  { %vm238_vm9 = vmor %vm236_vm8, %vm237_vm7 }
 0x34d   :  { %v233_v56 = vsub.f32 1.0, %v232_v55 }
 0x34f   :  { %v234_v57 = vmul.f32 %v1156_v54, %v233_v56 }
 0x350   :  { %v101_v44 = vpop.f32.mrf.mxu0 }
 0x351   :  { %v235_v58 = vadd.f32 %v1156_v54, %v234_v57  ;;  %v102_v45 = vadd.f32 %v1375_v10, %v101_v44 }
 0x353   :  { %v239_v61 = vsel %vm238_vm9, %v1156_v54, %v235_v58  ;;  %116 = vst.msk [vmem:[#allocation2 + $0x28] sm:$0xff] %vm110_vm1, %v102_v45  ;;  %v641_v45 = vld [vmem:[#allocation2 + $0x38] sm:$0xff] }
 0x354   :  { %v244_v0 = vsel %vm241_vm10, %v243_v62, %v239_v61 }
 0x3ab   :  { %v249_v63 = vpop.permute.xlu0 %248 }
 0x3ac   :  { %v251_v1 = vmul.f32 %v249_v63, %v244_v0 }
 0x3ae   :  { %253 = vrot.lane.b32.xlu1 %v251_v1, %s1253_s18 }
 0x420   :  { %v254_v2 = vpop.permute.xlu1 %253 }
 0x421   :  { %v256_v3 = vadd.f32 %v254_v2, %v203_v49  ;;  %v349_v49 = vld [vmem:[#allocation2 + $0x18] sm:$0xff] }
 0x423   :  { %1157 = vtanh.f32 %v256_v3 }
 0x429   :  { %v1158_v4 = vpop.eup %1157 }
 0x42a   :  { %v258_v5 = vsub.f32 %v196_v43, %v1158_v4 }
 0x42c   :  { %260 = vrot.lane.b32.xlu2 %v258_v5, %s1255_s3 }
 0x486   :  { %v261_v6 = vpop.permute.xlu2 %260 }
 0x487   :  { %v263_v7 = vmul.f32 %v261_v6, %v244_v0 }
 0x489   :  { %265 = vrot.lane.b32.xlu0 %v263_v7, %s1256_s23 }
 0x4fb   :  { %v266_v9 = vpop.permute.xlu0 %265 }
 0x4fc   :  { %v268_v11 = vadd.f32 %v1158_v4, %v266_v9 }
 0x4fe   :  { %270 = vrot.lane.b32.xlu1 %v268_v11, %s1253_s18 }
 0x570   :  { %v271_v14 = vpop.permute.xlu1 %270 }
 0x571   :  { %274 = vst.msk [vmem:[#allocation3 + $0x8] sm:$0xff] %vm127_vm6, %v271_v14  ;;  %1099 = vmatmul.msk.f32.vlgmr.msra.gmra.mxu3 %vm127_vm6, %v271_v14  ;;  %v99_v14 = vadd.f32 %v1375_v10, %v98_v13 }
 0x573   :  { %115 = vst.msk [vmem:[#allocation2 + $0x20] sm:$0xff] %vm110_vm1, %v99_v14 }
 0x5f4   :  { %v296_v16 = vpop.f32.mrf.mxu3 }
 0x5f5   :  { %v319_v17 = vadd.f32 %v296_v16, %v1381_v15  ;;  %v299_v19 = vadd.f32 %v296_v16, %v276_v18 }
 0x5f7   :  { %321 = vrot.lane.b32.xlu2 %v319_v17, %s1253_s18  ;;  %v1100_v20 = vmul.f32 -1.442695, %v299_v19 }
 0x5f9   :  { %1159 = vpow2.f32 %v1100_v20 }
 0x5ff   :  { %v1160_v21 = vpop.eup %1159 }
 0x600   :  { %v303_v22 = vadd.f32 1.0, %v1160_v21 }
 0x602   :  { %1161 = vrcp.f32 %v303_v22  ;;  %v315_v28 = vand.u32 2147483648, %v303_v22  ;;  %vm309_vm12 = vweird.f32 %v303_v22  ;;  %v313_v29 = vand.u32 2147483647, %v303_v22 }
 0x604   :  { %v316_v31 = vor.u32 1.1754944e-38, %v315_v28  ;;  %vm314_vm14 = vcmp.eq.f32.partialorder %v313_v29, 8.507059e+37 }
 0x608   :  { %v1162_v23 = vpop.eup %1161 }
 0x609   :  { %v305_v24 = vmul.f32 %v1162_v23, %v303_v22  ;;  %vm310_vm11 = vweird.f32 %v1162_v23 }
 0x60a   :  { %vm311_vm13 = vmor %vm309_vm12, %vm310_vm11 }
 0x60b   :  { %v306_v25 = vsub.f32 1.0, %v305_v24 }
 0x60d   :  { %v307_v26 = vmul.f32 %v1162_v23, %v306_v25 }
 0x60f   :  { %v308_v27 = vadd.f32 %v1162_v23, %v307_v26 }
 0x611   :  { %v312_v30 = vsel %vm311_vm13, %v1162_v23, %v308_v27 }
 0x612   :  { %v317_v33 = vsel %vm314_vm14, %v316_v31, %v312_v30 }
 0x651   :  { %v322_v32 = vpop.permute.xlu2 %321 }
 0x652   :  { %v324_v34 = vmul.f32 %v322_v32, %v317_v33 }
 0x654   :  { %326 = vrot.lane.b32.xlu0 %v324_v34, %s1253_s18 }
 0x6c6   :  { %v327_v35 = vpop.permute.xlu0 %326 }
 0x6c7   :  { %v329_v36 = vadd.f32 %v327_v35, %v276_v18  ;;  %v422_v18 = vld [vmem:[#allocation2 + $0x20] sm:$0xff] }
 0x6c9   :  { %1163 = vtanh.f32 %v329_v36 }
 0x6cf   :  { %v1164_v37 = vpop.eup %1163 }
 0x6d0   :  { %v331_v38 = vsub.f32 %v268_v11, %v1164_v37 }
 0x6d2   :  { %333 = vrot.lane.b32.xlu1 %v331_v38, %s1255_s3 }
 0x744   :  { %v334_v39 = vpop.permute.xlu1 %333 }
 0x745   :  { %v336_v40 = vmul.f32 %v334_v39, %v317_v33 }
 0x747   :  { %338 = vrot.lane.b32.xlu2 %v336_v40, %s1256_s23 }
 0x7a1   :  { %v339_v42 = vpop.permute.xlu2 %338 }
 0x7a2   :  { %v341_v43 = vadd.f32 %v1164_v37, %v339_v42 }
 0x7a4   :  { %343 = vrot.lane.b32.xlu0 %v341_v43, %s1253_s18 }
 0x816   :  { %v344_v46 = vpop.permute.xlu0 %343 }
 0x817   :  { %347 = vst.msk [vmem:[#allocation3 + $0x10] sm:$0xff] %vm127_vm6, %v344_v46  ;;  %1101 = vmatmul.msk.f32.vlgmr.msra.gmra.mxu1 %vm127_vm6, %v344_v46 }
 0x894   :  { %v369_v47 = vpop.f32.mrf.mxu1 }
 0x895   :  { %v392_v48 = vadd.f32 %v369_v47, %v1381_v15  ;;  %v372_v50 = vadd.f32 %v369_v47, %v349_v49 }
 0x897   :  { %394 = vrot.lane.b32.xlu1 %v392_v48, %s1253_s18  ;;  %v1102_v51 = vmul.f32 -1.442695, %v372_v50 }
 0x899   :  { %1165 = vpow2.f32 %v1102_v51 }
 0x89f   :  { %v1166_v52 = vpop.eup %1165 }
 0x8a0   :  { %v376_v53 = vadd.f32 1.0, %v1166_v52 }
 0x8a2   :  { %1167 = vrcp.f32 %v376_v53  ;;  %v388_v59 = vand.u32 2147483648, %v376_v53  ;;  %vm382_vm2 = vweird.f32 %v376_v53  ;;  %v386_v60 = vand.u32 2147483647, %v376_v53 }
 0x8a4   :  { %v389_v62 = vor.u32 1.1754944e-38, %v388_v59  ;;  %vm387_vm4 = vcmp.eq.f32.partialorder %v386_v60, 8.507059e+37 }
 0x8a8   :  { %v1168_v54 = vpop.eup %1167 }
 0x8a9   :  { %v378_v55 = vmul.f32 %v1168_v54, %v376_v53  ;;  %vm383_vm15 = vweird.f32 %v1168_v54 }
 0x8aa   :  { %vm384_vm3 = vmor %vm382_vm2, %vm383_vm15 }
 0x8ab   :  { %v379_v56 = vsub.f32 1.0, %v378_v55 }
 0x8ad   :  { %v380_v57 = vmul.f32 %v1168_v54, %v379_v56 }
 0x8af   :  { %v381_v58 = vadd.f32 %v1168_v54, %v380_v57 }
 0x8b1   :  { %v385_v61 = vsel %vm384_vm3, %v1168_v54, %v381_v58 }
 0x8b2   :  { %v390_v0 = vsel %vm387_vm4, %v389_v62, %v385_v61 }
 0x909   :  { %v395_v63 = vpop.permute.xlu1 %394 }
 0x90a   :  { %v397_v1 = vmul.f32 %v395_v63, %v390_v0 }
 0x90c   :  { %399 = vrot.lane.b32.xlu2 %v397_v1, %s1253_s18 }
 0x966   :  { %v400_v2 = vpop.permute.xlu2 %399 }
 0x967   :  { %v402_v3 = vadd.f32 %v400_v2, %v349_v49  ;;  %v495_v49 = vld [vmem:[#allocation2 + $0x28] sm:$0xff] }
 0x969   :  { %1169 = vtanh.f32 %v402_v3 }
 0x96f   :  { %v1170_v4 = vpop.eup %1169 }
 0x970   :  { %v404_v5 = vsub.f32 %v341_v43, %v1170_v4 }
 0x972   :  { %406 = vrot.lane.b32.xlu0 %v404_v5, %s1255_s3 }
 0x9e4   :  { %v407_v6 = vpop.permute.xlu0 %406 }
 0x9e5   :  { %v409_v7 = vmul.f32 %v407_v6, %v390_v0 }
 0x9e7   :  { %411 = vrot.lane.b32.xlu1 %v409_v7, %s1256_s23 }
 0xa59   :  { %v412_v9 = vpop.permute.xlu1 %411 }
 0xa5a   :  { %v414_v11 = vadd.f32 %v1170_v4, %v412_v9 }
 0xa5c   :  { %416 = vrot.lane.b32.xlu2 %v414_v11, %s1253_s18 }
 0xab6   :  { %v417_v12 = vpop.permute.xlu2 %416 }
 0xab7   :  { %420 = vst.msk [vmem:[#allocation3 + $0x18] sm:$0xff] %vm127_vm6, %v417_v12  ;;  %1103 = vmatmul.msk.f32.vlgmr.msrb.gmra.mxu2 %vm127_vm6, %v417_v12  ;;  %v104_v12 = vpop.f32.mrf.mxu0 }
 0xab8   :  { %v105_v13 = vadd.f32 %v1375_v10, %v104_v12 }
 0xaba   :  { %117 = vst.msk [vmem:[#allocation2 + $0x30] sm:$0xff] %vm110_vm1, %v105_v13 }
 0xb3a   :  { %v442_v16 = vpop.f32.mrf.mxu2 }
 0xb3b   :  { %v465_v17 = vadd.f32 %v442_v16, %v1381_v15  ;;  %v445_v19 = vadd.f32 %v442_v16, %v422_v18 }
 0xb3d   :  { %467 = vrot.lane.b32.xlu0 %v465_v17, %s1253_s18  ;;  %v1104_v20 = vmul.f32 -1.442695, %v445_v19 }
 0xb3f   :  { %1171 = vpow2.f32 %v1104_v20 }
 0xb45   :  { %v1172_v21 = vpop.eup %1171 }
 0xb46   :  { %v449_v22 = vadd.f32 1.0, %v1172_v21 }
 0xb48   :  { %1173 = vrcp.f32 %v449_v22  ;;  %v461_v28 = vand.u32 2147483648, %v449_v22  ;;  %vm455_vm7 = vweird.f32 %v449_v22  ;;  %v459_v29 = vand.u32 2147483647, %v449_v22 }
 0xb4a   :  { %v462_v31 = vor.u32 1.1754944e-38, %v461_v28  ;;  %vm460_vm9 = vcmp.eq.f32.partialorder %v459_v29, 8.507059e+37 }
 0xb4e   :  { %v1174_v23 = vpop.eup %1173 }
 0xb4f   :  { %v451_v24 = vmul.f32 %v1174_v23, %v449_v22  ;;  %vm456_vm5 = vweird.f32 %v1174_v23 }
 0xb50   :  { %vm457_vm8 = vmor %vm455_vm7, %vm456_vm5 }
 0xb51   :  { %v452_v25 = vsub.f32 1.0, %v451_v24 }
 0xb53   :  { %v453_v26 = vmul.f32 %v1174_v23, %v452_v25 }
 0xb55   :  { %v454_v27 = vadd.f32 %v1174_v23, %v453_v26 }
 0xb57   :  { %v458_v30 = vsel %vm457_vm8, %v1174_v23, %v454_v27 }
 0xb58   :  { %v463_v33 = vsel %vm460_vm9, %v462_v31, %v458_v30 }
 0xbaf   :  { %v468_v32 = vpop.permute.xlu0 %467 }
 0xbb0   :  { %v470_v34 = vmul.f32 %v468_v32, %v463_v33 }
 0xbb2   :  { %472 = vrot.lane.b32.xlu1 %v470_v34, %s1253_s18 }
 0xc24   :  { %v473_v35 = vpop.permute.xlu1 %472 }
 0xc25   :  { %v475_v36 = vadd.f32 %v473_v35, %v422_v18  ;;  %v568_v18 = vld [vmem:[#allocation2 + $0x30] sm:$0xff] }
 0xc27   :  { %1175 = vtanh.f32 %v475_v36 }
 0xc2d   :  { %v1176_v37 = vpop.eup %1175 }
 0xc2e   :  { %v477_v38 = vsub.f32 %v414_v11, %v1176_v37 }
 0xc30   :  { %479 = vrot.lane.b32.xlu2 %v477_v38, %s1255_s3 }
 0xc8a   :  { %v480_v39 = vpop.permute.xlu2 %479 }
 0xc8b   :  { %v482_v40 = vmul.f32 %v480_v39, %v463_v33 }
 0xc8d   :  { %484 = vrot.lane.b32.xlu0 %v482_v40, %s1256_s23 }
 0xcff   :  { %v485_v42 = vpop.permute.xlu0 %484 }
 0xd00   :  { %v487_v43 = vadd.f32 %v1176_v37, %v485_v42 }
 0xd02   :  { %489 = vrot.lane.b32.xlu1 %v487_v43, %s1253_s18 }
 0xd74   :  { %v490_v46 = vpop.permute.xlu1 %489 }
 0xd75   :  { %493 = vst.msk [vmem:[#allocation3 + $0x20] sm:$0xff] %vm127_vm6, %v490_v46  ;;  %1105 = vmatmul.msk.f32.vlgmr.msrb.gmra.mxu3 %vm127_vm6, %v490_v46 }
 0xdf8   :  { %v515_v47 = vpop.f32.mrf.mxu3 }
 0xdf9   :  { %v538_v48 = vadd.f32 %v515_v47, %v1381_v15  ;;  %v518_v50 = vadd.f32 %v515_v47, %v495_v49 }
 0xdfb   :  { %540 = vrot.lane.b32.xlu2 %v538_v48, %s1253_s18  ;;  %v1106_v51 = vmul.f32 -1.442695, %v518_v50  ;;  %v1257_v50 = vmov 0  }
 0xdfc   :  { %1141 = vset.pattern.permute.xlu1 %v1257_v50  ;;  %1142 = vset.pattern.permute.xlu2 %v1257_v50 }
 0xdfd   :  { %1177 = vpow2.f32 %v1106_v51  ;;  %1143 = vset.pattern.permute.xlu0 %v1257_v50 }
 0xe03   :  { %v1178_v52 = vpop.eup %1177 }
 0xe04   :  { %v522_v53 = vadd.f32 1.0, %v1178_v52 }
 0xe06   :  { %1179 = vrcp.f32 %v522_v53  ;;  %v534_v59 = vand.u32 2147483648, %v522_v53  ;;  %vm528_vm11 = vweird.f32 %v522_v53  ;;  %v532_v60 = vand.u32 2147483647, %v522_v53 }
 0xe08   :  { %v535_v62 = vor.u32 1.1754944e-38, %v534_v59  ;;  %vm533_vm13 = vcmp.eq.f32.partialorder %v532_v60, 8.507059e+37 }
 0xe0c   :  { %v1180_v54 = vpop.eup %1179 }
 0xe0d   :  { %v524_v55 = vmul.f32 %v1180_v54, %v522_v53  ;;  %vm529_vm10 = vweird.f32 %v1180_v54 }
 0xe0e   :  { %vm530_vm12 = vmor %vm528_vm11, %vm529_vm10 }
 0xe0f   :  { %v525_v56 = vsub.f32 1.0, %v524_v55 }
 0xe11   :  { %v526_v57 = vmul.f32 %v1180_v54, %v525_v56 }
 0xe13   :  { %v527_v58 = vadd.f32 %v1180_v54, %v526_v57 }
 0xe15   :  { %v531_v61 = vsel %vm530_vm12, %v1180_v54, %v527_v58 }
 0xe16   :  { %v536_v0 = vsel %vm533_vm13, %v535_v62, %v531_v61  ;;  %v717_v62 = vld [vmem:[%s1613_s7 + $0x20] sm:$0xff] }
 0xe17   :  { %vm725_vm7 = vcmp.gt.f32.partialorder %v717_v62, 0.0 }
 0xe55   :  { %v541_v63 = vpop.permute.xlu2 %540 }
 0xe56   :  { %v543_v1 = vmul.f32 %v541_v63, %v536_v0  ;;  %v741_v63 = vsel %vm725_vm7, 1, %v1257_v50 }
 0xe58   :  { %545 = vrot.lane.b32.xlu0 %v543_v1, %s1253_s18 }
 0xeca   :  { %v546_v2 = vpop.permute.xlu0 %545 }
 0xecb   :  { %v548_v3 = vadd.f32 %v546_v2, %v495_v49  ;;  %v788_v2 = vld [vmem:[%s1611_s5 + $0x18] sm:$0xff] }
 0xecc   :  { %1129 = vmatpush.msra.mxu3 %v788_v2  ;;  %829 = vmatpush.msra.mxu1 %v788_v2 }
 0xecd   :  { %1181 = vtanh.f32 %v548_v3  ;;  %v787_v3 = vld [vmem:[%s1611_s5 + $0x10] sm:$0xff] }
 0xece   :  { %1130 = vmatpush.msra.mxu3 %v787_v3  ;;  %830 = vmatpush.msra.mxu1 %v787_v3 }
 0xed3   :  { %v1182_v4 = vpop.eup %1181 }
 0xed4   :  { %v550_v5 = vsub.f32 %v487_v43, %v1182_v4 }
 0xed6   :  { %552 = vrot.lane.b32.xlu1 %v550_v5, %s1255_s3  ;;  %v785_v5 = vld [vmem:[%s1611_s5] sm:$0xff] }
 0xf48   :  { %v553_v6 = vpop.permute.xlu1 %552 }
 0xf49   :  { %v555_v7 = vmul.f32 %v553_v6, %v536_v0  ;;  %v714_v0 = vld [vmem:[%s1613_s7 + $0x8] sm:$0xff] }
 0xf4a   :  { %vm722_vm8 = vcmp.gt.f32.partialorder %v714_v0, 0.0 }
 0xf4b   :  { %557 = vrot.lane.b32.xlu2 %v555_v7, %s1256_s23  ;;  %v738_v1 = vsel %vm722_vm8, 1, %v1257_v50 }
 0xfa5   :  { %v558_v9 = vpop.permute.xlu2 %557 }
 0xfa6   :  { %v560_v11 = vadd.f32 %v1182_v4, %v558_v9  ;;  %v786_v4 = vld [vmem:[%s1611_s5 + $0x8] sm:$0xff] }
 0xfa7   :  { %1131 = vmatpush.msra.mxu3 %v786_v4  ;;  %831 = vmatpush.msra.mxu1 %v786_v4 }
 0xfa8   :  { %562 = vrot.lane.b32.xlu0 %v560_v11, %s1253_s18 }
 0xfa9   :  { %1132 = vmatpush.msra.mxu3 %v785_v5  ;;  %832 = vmatpush.msra.mxu1 %v785_v5 }
0x101a   :  { %v563_v14 = vpop.permute.xlu0 %562 }
0x101b   :  { %566 = vst.msk [vmem:[#allocation3 + $0x28] sm:$0xff] %vm127_vm6, %v563_v14  ;;  %1107 = vmatmul.msk.f32.vlgmr.msrb.gmra.mxu1 %vm127_vm6, %v563_v14  ;;  %v713_v14 = vld [vmem:[%s1613_s7] sm:$0xff] }
0x101c   :  { %vm721_vm10 = vcmp.gt.f32.partialorder %v713_v14, 0.0 }
0x1098   :  { %v588_v16 = vpop.f32.mrf.mxu1 }
0x1099   :  { %v611_v17 = vadd.f32 %v588_v16, %v1381_v15  ;;  %v591_v19 = vadd.f32 %v588_v16, %v568_v18  ;;  %v737_v16 = vsel %vm721_vm10, 1, %v1257_v50 }
0x109b   :  { %613 = vrot.lane.b32.xlu1 %v611_v17, %s1253_s18  ;;  %v1108_v20 = vmul.f32 -1.442695, %v591_v19  ;;  %v719_v17 = vld [vmem:[%s1613_s7 + $0x30] sm:$0xff] }
0x109c   :  { %vm727_vm11 = vcmp.gt.f32.partialorder %v719_v17, 0.0  ;;  %v715_v19 = vld [vmem:[%s1613_s7 + $0x10] sm:$0xff] }
0x109d   :  { %1183 = vpow2.f32 %v1108_v20  ;;  %vm723_vm12 = vcmp.gt.f32.partialorder %v715_v19, 0.0 }
0x109e   :  { %v739_v20 = vsel %vm723_vm12, 1, %v1257_v50 }
0x10a3   :  { %v1184_v21 = vpop.eup %1183 }
0x10a4   :  { %v595_v22 = vadd.f32 1.0, %v1184_v21 }
0x10a6   :  { %1185 = vrcp.f32 %v595_v22  ;;  %v607_v27 = vand.u32 2147483648, %v595_v22  ;;  %vm601_vm1 = vweird.f32 %v595_v22  ;;  %v605_v28 = vand.u32 2147483647, %v595_v22 }
0x10a8   :  { %v608_v30 = vor.u32 1.1754944e-38, %v607_v27  ;;  %vm606_vm15 = vcmp.eq.f32.partialorder %v605_v28, 8.507059e+37 }
0x10ac   :  { %v1186_v10 = vpop.eup %1185 }
0x10ad   :  { %v597_v23 = vmul.f32 %v1186_v10, %v595_v22  ;;  %vm602_vm0 = vweird.f32 %v1186_v10 }
0x10ae   :  { %vm603_vm14 = vmor %vm601_vm1, %vm602_vm0 }
0x10af   :  { %v598_v24 = vsub.f32 1.0, %v597_v23 }
0x10b1   :  { %v599_v25 = vmul.f32 %v1186_v10, %v598_v24 }
0x10b3   :  { %v600_v26 = vadd.f32 %v1186_v10, %v599_v25  ;;  %v729_v25 = vld [vmem:[#allocation3] sm:$0xff] }
0x10b5   :  { %v604_v29 = vsel %vm603_vm14, %v1186_v10, %v600_v26  ;;  %v718_v10 = vld [vmem:[%s1613_s7 + $0x28] sm:$0xff] }
0x10b6   :  { %v609_v32 = vsel %vm606_vm15, %v608_v30, %v604_v29  ;;  %vm726_vm13 = vcmp.gt.f32.partialorder %v718_v10, 0.0  ;;  %v730_v29 = vld [vmem:[#allocation3 + $0x8] sm:$0xff] }
0x10b7   :  { %v742_v24 = vsel %vm726_vm13, 1, %v1257_v50 }
0x110d   :  { %v614_v31 = vpop.permute.xlu1 %613 }
0x110e   :  { %v616_v33 = vmul.f32 %v614_v31, %v609_v32 }
0x1110   :  { %618 = vrot.lane.b32.xlu2 %v616_v33, %s1253_s18 }
0x116a   :  { %v619_v34 = vpop.permute.xlu2 %618 }
0x116b   :  { %v621_v35 = vadd.f32 %v619_v34, %v568_v18  ;;  %v743_v18 = vsel %vm727_vm11, 1, %v1257_v50  ;;  %v1537_v34 = vld [vmem:[%s1612_s6] ss:$0 sm:$0xff] }
0x116d   :  { %1187 = vtanh.f32 %v621_v35 }
0x1173   :  { %v1188_v36 = vpop.eup %1187 }
0x1174   :  { %v623_v37 = vsub.f32 %v560_v11, %v1188_v36  ;;  %v733_v11 = vld [vmem:[#allocation3 + $0x20] sm:$0xff] }
0x1176   :  { %625 = vrot.lane.b32.xlu0 %v623_v37, %s1255_s3 }
0x11e8   :  { %v626_v38 = vpop.permute.xlu0 %625 }
0x11e9   :  { %v628_v39 = vmul.f32 %v626_v38, %v609_v32  ;;  %v731_v32 = vld [vmem:[#allocation3 + $0x10] sm:$0xff]  ;;  %v720_v38 = vld [vmem:[%s1613_s7 + $0x38] sm:$0xff] }
0x11ea   :  { %vm728_vm15 = vcmp.gt.f32.partialorder %v720_v38, 0.0 }
0x11eb   :  { %630 = vrot.lane.b32.xlu1 %v628_v39, %s1256_s23  ;;  %v744_v39 = vsel %vm728_vm15, 1, %v1257_v50 }
0x125d   :  { %v631_v40 = vpop.permute.xlu1 %630 }
0x125e   :  { %v1476_v41 = vadd.f32 %v1188_v36, %v631_v40 }
0x1260   :  { %635 = vrot.lane.b32.xlu2 %v1476_v41, %s1253_s18 }
0x12ba   :  { %v636_v42 = vpop.permute.xlu2 %635 }
0x12bb   :  { %639 = vst.msk [vmem:[#allocation3 + $0x30] sm:$0xff] %vm127_vm6, %v636_v42  ;;  %1109 = vmatmul.msk.f32.vlgmr.msra.gmra.mxu2 %vm127_vm6, %v636_v42  ;;  %v858_v42 = vlaneseq }
0x133e   :  { %v661_v43 = vpop.f32.mrf.mxu2 }
0x133f   :  { %v684_v44 = vadd.f32 %v661_v43, %v1381_v15  ;;  %v664_v46 = vadd.f32 %v661_v43, %v641_v45 }
0x1341   :  { %686 = vrot.lane.b32.xlu0 %v684_v44, %s1253_s18  ;;  %v1110_v47 = vmul.f32 -1.442695, %v664_v46  ;;  %v1544_v44 = vand.u32 127, %v858_v42 }
0x1343   :  { %1189 = vpow2.f32 %v1110_v47  ;;  %vm1023_vm10 = vcmp.ge.s32.totalorder %v1544_v44, 9 }
0x1349   :  { %v1190_v48 = vpop.eup %1189 }
0x134a   :  { %v668_v49 = vadd.f32 1.0, %v1190_v48 }
0x134c   :  { %1191 = vrcp.f32 %v668_v49  ;;  %v680_v55 = vand.u32 2147483648, %v668_v49  ;;  %vm674_vm3 = vweird.f32 %v668_v49  ;;  %v678_v56 = vand.u32 2147483647, %v668_v49 }
0x134e   :  { %v681_v58 = vor.u32 1.1754944e-38, %v680_v55  ;;  %vm679_vm5 = vcmp.eq.f32.partialorder %v678_v56, 8.507059e+37 }
0x1352   :  { %v1192_v51 = vpop.eup %1191 }
0x1353   :  { %v670_v52 = vmul.f32 %v1192_v51, %v668_v49  ;;  %vm675_vm2 = vweird.f32 %v1192_v51 }
0x1354   :  { %vm676_vm4 = vmor %vm674_vm3, %vm675_vm2  ;;  %vm860_vm2 = vcmp.ge.s32.totalorder %v1544_v44, 7  ;;  %vm861_vm3 = vcmp.lt.s32.totalorder %v1544_v44, 9 }
0x1355   :  { %v671_v53 = vsub.f32 1.0, %v670_v52 }
0x1357   :  { %v672_v15 = vmul.f32 %v1192_v51, %v671_v53 }
0x1359   :  { %v673_v54 = vadd.f32 %v1192_v51, %v672_v15 }
0x135b   :  { %v677_v57 = vsel %vm676_vm4, %v1192_v51, %v673_v54 }
0x135c   :  { %v682_v60 = vsel %vm679_vm5, %v681_v58, %v677_v57  ;;  %vm1548_vm5 = vmand %vm860_vm2, %vm861_vm3 }
0x13b3   :  { %v687_v59 = vpop.permute.xlu0 %686 }
0x13b4   :  { %v689_v61 = vmul.f32 %v687_v59, %v682_v60 }
0x13b6   :  { %691 = vrot.lane.b32.xlu1 %v689_v61, %s1253_s18 }
0x13be   :  { %758 = vperm.xlu1 %1141, %v741_v63   ;;  %v734_v63 = vld [vmem:[#allocation3 + $0x28] sm:$0xff] }
0x13c6   :  { %749 = vperm.xlu1 %1141, %v738_v1   ;;  %v735_v1 = vld [vmem:[#allocation3 + $0x30] sm:$0xff] }
0x1428   :  { %v692_v6 = vpop.permute.xlu1 %691 }
0x1429   :  { %v694_v7 = vadd.f32 %v692_v6, %v641_v45 }
0x142b   :  { %1193 = vtanh.f32 %v694_v7 }
0x1430   :  { %v759_v8 = vpop.permute.xlu1 %758 }
0x1431   :  { %v1508_v9 = vpop.eup %1193  ;;  %vm773_vm9 = vcmp.eq.s32.totalorder %v759_v8, 1 }
0x1432   :  { %v781_v12 = vsel %vm773_vm9, %v733_v11, 0.0  ;;  %v696_v13 = vsub.f32 %v1476_v41, %v1508_v9 }
0x1433   :  { %1115 = vmatmul.msk.f32.vlgmr.msra.gmra.mxu3 %vm127_vm6, %v781_v12 }
0x1434   :  { %698 = vrot.lane.b32.xlu2 %v696_v13, %s1255_s3 }
0x1438   :  { %v750_v27 = vpop.permute.xlu1 %749 }
0x1439   :  { %vm770_vm1 = vcmp.eq.s32.totalorder %v750_v27, 1 }
0x143a   :  { %v778_v30 = vsel %vm770_vm1, %v730_v29, 0.0 }
0x143c   :  { %746 = vperm.xlu2 %1142, %v737_v16  }
0x1444   :  { %764 = vperm.xlu2 %1142, %v743_v18  }
0x144c   :  { %752 = vperm.xlu2 %1142, %v739_v20  }
0x148e   :  { %v699_v21 = vpop.permute.xlu2 %698 }
0x148f   :  { %v701_v22 = vmul.f32 %v699_v21, %v682_v60  ;;  %v716_v60 = vld [vmem:[%s1613_s7 + $0x18] sm:$0xff]  ;;  %s1258_s7 = smov [#allocation5]  }
0x1490   :  { %vm724_vm11 = vcmp.gt.f32.partialorder %v716_v60, 0.0 }
0x1491   :  { %703 = vrot.lane.b32.xlu0 %v701_v22, %s1256_s23  ;;  %v740_v62 = vsel %vm724_vm11, 1, %v1257_v50 }
0x1496   :  { %v747_v23 = vpop.permute.xlu2 %746 }
0x1497   :  { %vm769_vm0 = vcmp.eq.s32.totalorder %v747_v23, 1 }
0x1498   :  { %v777_v26 = vsel %vm769_vm0, %v729_v25, 0.0 }
0x1499   :  { %761 = vperm.xlu0 %1143, %v742_v24   ;;  %1111 = vmatmul.msk.f32.vlgmr.msra.gmra.mxu1 %vm127_vm6, %v777_v26 }
0x149e   :  { %v765_v28 = vpop.permute.xlu2 %764 }
0x149f   :  { %vm775_vm13 = vcmp.eq.s32.totalorder %v765_v28, 1 }
0x14a0   :  { %v783_v2 = vsel %vm775_vm13, %v735_v1, 0.0 }
0x14a1   :  { %1112 = vmatmul.msk.f32.gmra.mxu1 %vm127_vm6, %v778_v30  ;;  %767 = vperm.xlu0 %1143, %v744_v39  }
0x14a6   :  { %v753_v31 = vpop.permute.xlu2 %752 }
0x14a7   :  { %vm771_vm14 = vcmp.eq.s32.totalorder %v753_v31, 1 }
0x14a8   :  { %v779_v33 = vsel %vm771_vm14, %v731_v32, 0.0 }
0x14a9   :  { %1113 = vmatmul.msk.f32.gmra.mxu1 %vm127_vm6, %v779_v33 }
0x14b6   :  { %v846_v35 = vpop.f32.mrf.mxu3 }
0x14b7   :  { %v847_v36 = vadd.f32 %v1537_v34, %v846_v35 }
0x14b9   :  { %v1123_v37 = vmul.f32 -1.442695, %v847_v36 }
0x14bb   :  { %1195 = vpow2.f32 %v1123_v37 }
0x14c1   :  { %v1196_v40 = vpop.eup %1195 }
0x14c2   :  { %v891_v41 = vadd.f32 1.0, %v1196_v40 }
0x14c4   :  { %1197 = vrcp.f32 %v891_v41  ;;  %v966_v47 = vand.u32 2147483648, %v891_v41  ;;  %v964_v49 = vand.u32 2147483647, %v891_v41  ;;  %vm960_vm7 = vweird.f32 %v891_v41 }
0x14c6   :  { %v967_v53 = vor.u32 1.1754944e-38, %v966_v47  ;;  %vm965_vm9 = vcmp.eq.f32.partialorder %v964_v49, 8.507059e+37 }
0x14ca   :  { %v1198_v43 = vpop.eup %1197 }
0x14cb   :  { %v956_v45 = vmul.f32 %v1198_v43, %v891_v41  ;;  %vm961_vm4 = vweird.f32 %v1198_v43 }
0x14cc   :  { %vm962_vm8 = vmor %vm960_vm7, %vm961_vm4 }
0x14cd   :  { %v957_v46 = vsub.f32 1.0, %v956_v45 }
0x14cf   :  { %v958_v48 = vmul.f32 %v1198_v43, %v957_v46 }
0x14d1   :  { %v959_v52 = vadd.f32 %v1198_v43, %v958_v48 }
0x14d3   :  { %v963_v15 = vsel %vm962_vm8, %v1198_v43, %v959_v52 }
0x14d4   :  { %v968_v54 = vsel %vm965_vm9, %v967_v53, %v963_v15 }
0x14d5   :  { %v1019_v55 = vsel %vm1548_vm5, %v968_v54, %v847_v36 }
0x14d6   :  { %v1028_v56 = vmax.f32 %v1019_v55, 0.0 }
0x14d8   :  { %v1036_v57 = vsel %vm1023_vm10, %v1028_v56, %v1019_v55 }
0x14d9   :  { %1044 = vst [vmem:[#allocation4 + $0x20] sm:$0xff] %v1036_v57 }
0x1503   :  { %v704_v58 = vpop.permute.xlu0 %703 }
0x1504   :  { %v706_v59 = vadd.f32 %v1508_v9, %v704_v58 }
0x1506   :  { %708 = vrot.lane.b32.xlu1 %v706_v59, %s1253_s18  ;;  %s1074_s18 = sshll.u32 %s1258_s7, 4  ;;  %s1075_s18 = int_to_ptr.vmem [resolvable:$true] %s1074_s18 }
0x150b   :  { %v762_v61 = vpop.permute.xlu0 %761 }
0x150c   :  { %vm774_vm12 = vcmp.eq.s32.totalorder %v762_v61, 1 }
0x150d   :  { %v782_v0 = vsel %vm774_vm12, %v734_v63, 0.0 }
0x150e   :  { %755 = vperm.xlu1 %1141, %v740_v62   ;;  %1116 = vmatmul.msk.f32.gmra.mxu3 %vm127_vm6, %v782_v0  ;;  %v732_v0 = vld [vmem:[#allocation3 + $0x18] sm:$0xff] }
0x1513   :  { %v768_v61 = vpop.permute.xlu0 %767 }
0x1514   :  { %vm776_vm13 = vcmp.eq.s32.totalorder %v768_v61, 1 }
0x1516   :  { %v834_v3 = vpop.f32.mrf.mxu1  ;;  %1117 = vmatmul.msk.f32.gmra.mxu3 %vm127_vm6, %v783_v2 }
0x1517   :  { %v835_v4 = vadd.f32 %v1537_v34, %v834_v3 }
0x1519   :  { %v1119_v5 = vmul.f32 -1.442695, %v835_v4 }
0x151b   :  { %1199 = vpow2.f32 %v1119_v5 }
0x151e   :  { %v837_v6 = vpop.f32.mrf.mxu1 }
0x151f   :  { %v838_v7 = vadd.f32 %v1537_v34, %v837_v6 }
0x1521   :  { %v1200_v50 = vpop.eup %1199  ;;  %v1120_v8 = vmul.f32 -1.442695, %v838_v7 }
0x1522   :  { %v887_v9 = vadd.f32 1.0, %v1200_v50 }
0x1523   :  { %1201 = vpow2.f32 %v1120_v8 }
0x1524   :  { %1203 = vrcp.f32 %v887_v9  ;;  %v906_v20 = vand.u32 2147483648, %v887_v9  ;;  %v904_v22 = vand.u32 2147483647, %v887_v9  ;;  %vm900_vm1 = vweird.f32 %v887_v9 }
0x1526   :  { %v840_v11 = vpop.f32.mrf.mxu1  ;;  %v907_v25 = vor.u32 1.1754944e-38, %v906_v20  ;;  %vm905_vm15 = vcmp.eq.f32.partialorder %v904_v22, 8.507059e+37 }
0x1527   :  { %v841_v12 = vadd.f32 %v1537_v34, %v840_v11 }
0x1529   :  { %v1202_v13 = vpop.eup %1201  ;;  %v1121_v14 = vmul.f32 -1.442695, %v841_v12 }
0x152a   :  { %v1204_v16 = vpop.eup %1203  ;;  %v888_v17 = vadd.f32 1.0, %v1202_v13 }
0x152b   :  { %v896_v18 = vmul.f32 %v1204_v16, %v887_v9  ;;  %1205 = vpow2.f32 %v1121_v14  ;;  %vm901_vm0 = vweird.f32 %v1204_v16 }
0x152c   :  { %1207 = vrcp.f32 %v888_v17  ;;  %vm902_vm14 = vmor %vm900_vm1, %vm901_vm0  ;;  %v921_v33 = vand.u32 2147483648, %v888_v17  ;;  %v919_v36 = vand.u32 2147483647, %v888_v17  ;;  %vm915_vm3 = vweird.f32 %v888_v17 }
0x152d   :  { %v897_v19 = vsub.f32 1.0, %v896_v18 }
0x152e   :  { %v922_v40 = vor.u32 1.1754944e-38, %v921_v33  ;;  %vm920_vm7 = vcmp.eq.f32.partialorder %v919_v36, 8.507059e+37 }
0x152f   :  { %v898_v21 = vmul.f32 %v1204_v16, %v897_v19 }
0x1531   :  { %v1206_v10 = vpop.eup %1205  ;;  %v899_v23 = vadd.f32 %v1204_v16, %v898_v21 }
0x1532   :  { %v1208_v24 = vpop.eup %1207  ;;  %v889_v26 = vadd.f32 1.0, %v1206_v10 }
0x1533   :  { %v903_v27 = vsel %vm902_vm14, %v1204_v16, %v899_v23  ;;  %v911_v28 = vmul.f32 %v1208_v24, %v888_v17  ;;  %vm916_vm2 = vweird.f32 %v1208_v24 }
0x1534   :  { %v908_v29 = vsel %vm905_vm15, %v907_v25, %v903_v27  ;;  %1209 = vrcp.f32 %v889_v26  ;;  %vm917_vm4 = vmor %vm915_vm3, %vm916_vm2  ;;  %v936_v48 = vand.u32 2147483648, %v889_v26  ;;  %v934_v52 = vand.u32 2147483647, %v889_v26 }
0x1535   :  { %v1015_v30 = vsel %vm1548_vm5, %v908_v29, %v835_v4  ;;  %v912_v31 = vsub.f32 1.0, %v911_v28  ;;  %vm930_vm9 = vweird.f32 %v889_v26 }
0x1536   :  { %v1024_v32 = vmax.f32 %v1015_v30, 0.0  ;;  %v937_v54 = vor.u32 1.1754944e-38, %v936_v48  ;;  %vm935_vm12 = vcmp.eq.f32.partialorder %v934_v52, 8.507059e+37 }
0x1537   :  { %v913_v35 = vmul.f32 %v1208_v24, %v912_v31 }
0x1538   :  { %v1032_v37 = vsel %vm1023_vm10, %v1024_v32, %v1015_v30 }
0x1539   :  { %1040 = vst [vmem:[#allocation4] sm:$0xff] %v1032_v37  ;;  %v914_v38 = vadd.f32 %v1208_v24, %v913_v35 }
0x153a   :  { %v1210_v39 = vpop.eup %1209 }
0x153b   :  { %v918_v41 = vsel %vm917_vm4, %v1208_v24, %v914_v38  ;;  %v926_v42 = vmul.f32 %v1210_v39, %v889_v26  ;;  %vm931_vm8 = vweird.f32 %v1210_v39 }
0x153c   :  { %v923_v43 = vsel %vm920_vm7, %v922_v40, %v918_v41  ;;  %vm932_vm11 = vmor %vm930_vm9, %vm931_vm8 }
0x153d   :  { %v1016_v45 = vsel %vm1548_vm5, %v923_v43, %v838_v7  ;;  %v927_v46 = vsub.f32 1.0, %v926_v42 }
0x153e   :  { %v1025_v47 = vmax.f32 %v1016_v45, 0.0 }
0x153f   :  { %v928_v49 = vmul.f32 %v1210_v39, %v927_v46 }
0x1540   :  { %v1033_v53 = vsel %vm1023_vm10, %v1025_v47, %v1016_v45 }
0x1541   :  { %1041 = vst [vmem:[#allocation4 + $0x8] sm:$0xff] %v1033_v53  ;;  %v929_v15 = vadd.f32 %v1210_v39, %v928_v49 }
0x1543   :  { %v933_v55 = vsel %vm932_vm11, %v1210_v39, %v929_v15 }
0x1544   :  { %v938_v56 = vsel %vm935_vm12, %v937_v54, %v933_v55 }
0x1545   :  { %v1017_v57 = vsel %vm1548_vm5, %v938_v56, %v841_v12 }
0x1546   :  { %v1026_v58 = vmax.f32 %v1017_v57, 0.0 }
0x1548   :  { %v1034_v59 = vsel %vm1023_vm10, %v1026_v58, %v1017_v57 }
0x1549   :  { %1042 = vst [vmem:[#allocation4 + $0x10] sm:$0xff] %v1034_v59 }
0x1578   :  { %v709_v60 = vpop.permute.xlu1 %708 }
0x1579   :  { %712 = vst.msk [vmem:[#allocation3 + $0x38] sm:$0xff] %vm127_vm6, %v709_v60 }
0x1580   :  { %v756_v62 = vpop.permute.xlu1 %755  ;;  %v736_v63 = vld [vmem:[#allocation3 + $0x38] sm:$0xff] }
0x1581   :  { %vm772_vm0 = vcmp.eq.s32.totalorder %v756_v62, 1  ;;  %v784_v1 = vsel %vm776_vm13, %v736_v63, 0.0 }
0x1582   :  { %v780_v2 = vsel %vm772_vm0, %v732_v0, 0.0  ;;  %1118 = vmatmul.msk.f32.gmra.mxu3 %vm127_vm6, %v784_v1 }
0x1583   :  { %1114 = vmatmul.msk.f32.gmra.mxu1 %vm127_vm6, %v780_v2 }
0x1591   :  { %v849_v3 = vpop.f32.mrf.mxu3 }
0x1592   :  { %v850_v4 = vadd.f32 %v1537_v34, %v849_v3 }
0x1594   :  { %v1124_v5 = vmul.f32 -1.442695, %v850_v4 }
0x1596   :  { %1211 = vpow2.f32 %v1124_v5 }
0x1599   :  { %v852_v6 = vpop.f32.mrf.mxu3 }
0x159a   :  { %v853_v7 = vadd.f32 %v1537_v34, %v852_v6 }
0x159c   :  { %v1212_v50 = vpop.eup %1211  ;;  %v1125_v8 = vmul.f32 -1.442695, %v853_v7 }
0x159d   :  { %v892_v9 = vadd.f32 1.0, %v1212_v50 }
0x159e   :  { %1213 = vpow2.f32 %v1125_v8 }
0x159f   :  { %1215 = vrcp.f32 %v892_v9  ;;  %v981_v17 = vand.u32 2147483648, %v892_v9  ;;  %v979_v19 = vand.u32 2147483647, %v892_v9  ;;  %vm975_vm1 = vweird.f32 %v892_v9 }
0x15a1   :  { %v982_v22 = vor.u32 1.1754944e-38, %v981_v17  ;;  %vm980_vm15 = vcmp.eq.f32.partialorder %v979_v19, 8.507059e+37 }
0x15a4   :  { %v1214_v11 = vpop.eup %1213 }
0x15a5   :  { %v1216_v12 = vpop.eup %1215  ;;  %v893_v13 = vadd.f32 1.0, %v1214_v11 }
0x15a6   :  { %v971_v14 = vmul.f32 %v1216_v12, %v892_v9  ;;  %vm976_vm6 = vweird.f32 %v1216_v12 }
0x15a7   :  { %1217 = vrcp.f32 %v893_v13  ;;  %vm977_vm14 = vmor %vm975_vm1, %vm976_vm6  ;;  %v996_v28 = vand.u32 2147483648, %v893_v13  ;;  %v994_v30 = vand.u32 2147483647, %v893_v13  ;;  %vm990_vm3 = vweird.f32 %v893_v13 }
0x15a8   :  { %v972_v16 = vsub.f32 1.0, %v971_v14 }
0x15a9   :  { %v997_v33 = vor.u32 1.1754944e-38, %v996_v28  ;;  %vm995_vm7 = vcmp.eq.f32.partialorder %v994_v30, 8.507059e+37 }
0x15aa   :  { %v973_v18 = vmul.f32 %v1216_v12, %v972_v16 }
0x15ac   :  { %v974_v20 = vadd.f32 %v1216_v12, %v973_v18 }
0x15ad   :  { %v1218_v21 = vpop.eup %1217 }
0x15ae   :  { %v978_v10 = vsel %vm977_vm14, %v1216_v12, %v974_v20  ;;  %v986_v23 = vmul.f32 %v1218_v21, %v893_v13  ;;  %vm991_vm2 = vweird.f32 %v1218_v21 }
0x15af   :  { %v983_v24 = vsel %vm980_vm15, %v982_v22, %v978_v10  ;;  %vm992_vm4 = vmor %vm990_vm3, %vm991_vm2 }
0x15b0   :  { %v1020_v25 = vsel %vm1548_vm5, %v983_v24, %v850_v4  ;;  %v987_v26 = vsub.f32 1.0, %v986_v23 }
0x15b1   :  { %v1029_v27 = vmax.f32 %v1020_v25, 0.0 }
0x15b2   :  { %v988_v29 = vmul.f32 %v1218_v21, %v987_v26 }
0x15b3   :  { %v1037_v31 = vsel %vm1023_vm10, %v1029_v27, %v1020_v25 }
0x15b4   :  { %1045 = vst [vmem:[#allocation4 + $0x28] sm:$0xff] %v1037_v31  ;;  %v989_v32 = vadd.f32 %v1218_v21, %v988_v29 }
0x15b6   :  { %v993_v35 = vsel %vm992_vm4, %v1218_v21, %v989_v32 }
0x15b7   :  { %v998_v36 = vsel %vm995_vm7, %v997_v33, %v993_v35 }
0x15b8   :  { %v1021_v37 = vsel %vm1548_vm5, %v998_v36, %v853_v7 }
0x15b9   :  { %v1030_v38 = vmax.f32 %v1021_v37, 0.0 }
0x15bb   :  { %v1038_v39 = vsel %vm1023_vm10, %v1030_v38, %v1021_v37 }
0x15bc   :  { %1046 = vst [vmem:[#allocation4 + $0x30] sm:$0xff] %v1038_v39 }
0x1600   :  { %v843_v40 = vpop.f32.mrf.mxu1 }
0x1601   :  { %v844_v41 = vadd.f32 %v1537_v34, %v843_v40 }
0x1603   :  { %v1122_v42 = vmul.f32 -1.442695, %v844_v41 }
0x1605   :  { %1219 = vpow2.f32 %v1122_v42  ;;  %v855_v43 = vpop.f32.mrf.mxu3 }
0x1606   :  { %v856_v45 = vadd.f32 %v1537_v34, %v855_v43 }
0x1608   :  { %v1126_v46 = vmul.f32 -1.442695, %v856_v45 }
0x160a   :  { %1221 = vpow2.f32 %v1126_v46 }
0x160b   :  { %v1220_v47 = vpop.eup %1219 }
0x160c   :  { %v890_v48 = vadd.f32 1.0, %v1220_v47 }
0x160e   :  { %1223 = vrcp.f32 %v890_v48  ;;  %v951_v55 = vand.u32 2147483648, %v890_v48  ;;  %v949_v58 = vand.u32 2147483647, %v890_v48  ;;  %vm945_vm9 = vweird.f32 %v890_v48 }
0x1610   :  { %v1222_v49 = vpop.eup %1221  ;;  %v952_v34 = vor.u32 1.1754944e-38, %v951_v55  ;;  %vm950_vm12 = vcmp.eq.f32.partialorder %v949_v58, 8.507059e+37 }
0x1611   :  { %v894_v52 = vadd.f32 1.0, %v1222_v49 }
0x1613   :  { %1225 = vrcp.f32 %v894_v52  ;;  %v1011_v63 = vand.u32 2147483648, %v894_v52  ;;  %v1009_v2 = vand.u32 2147483647, %v894_v52  ;;  %vm1005_vm0 = vweird.f32 %v894_v52 }
0x1614   :  { %v1224_v53 = vpop.eup %1223 }
0x1615   :  { %v941_v15 = vmul.f32 %v1224_v53, %v890_v48  ;;  %vm946_vm8 = vweird.f32 %v1224_v53  ;;  %v1012_v6 = vor.u32 1.1754944e-38, %v1011_v63  ;;  %vm1010_vm1 = vcmp.eq.f32.partialorder %v1009_v2, 8.507059e+37 }
0x1616   :  { %vm947_vm11 = vmor %vm945_vm9, %vm946_vm8 }
0x1617   :  { %v942_v54 = vsub.f32 1.0, %v941_v15 }
0x1619   :  { %v1226_v56 = vpop.eup %1225  ;;  %v943_v57 = vmul.f32 %v1224_v53, %v942_v54 }
0x161a   :  { %v1001_v59 = vmul.f32 %v1226_v56, %v894_v52  ;;  %vm1006_vm13 = vweird.f32 %v1226_v56 }
0x161b   :  { %v944_v60 = vadd.f32 %v1224_v53, %v943_v57  ;;  %vm1007_vm6 = vmor %vm1005_vm0, %vm1006_vm13 }
0x161c   :  { %v1002_v61 = vsub.f32 1.0, %v1001_v59 }
0x161d   :  { %v948_v62 = vsel %vm947_vm11, %v1224_v53, %v944_v60 }
0x161e   :  { %v953_v0 = vsel %vm950_vm12, %v952_v34, %v948_v62  ;;  %v1003_v1 = vmul.f32 %v1226_v56, %v1002_v61 }
0x161f   :  { %v1018_v3 = vsel %vm1548_vm5, %v953_v0, %v844_v41 }
0x1620   :  { %v1027_v4 = vmax.f32 %v1018_v3, 0.0  ;;  %v1004_v5 = vadd.f32 %v1226_v56, %v1003_v1 }
0x1622   :  { %v1035_v7 = vsel %vm1023_vm10, %v1027_v4, %v1018_v3  ;;  %v1008_v50 = vsel %vm1007_vm6, %v1226_v56, %v1004_v5 }
0x1623   :  { %1043 = vst [vmem:[#allocation4 + $0x18] sm:$0xff] %v1035_v7  ;;  %v1013_v8 = vsel %vm1010_vm1, %v1012_v6, %v1008_v50 }
0x1624   :  { %v1022_v9 = vsel %vm1548_vm5, %v1013_v8, %v856_v45 }
0x1625   :  { %v1031_v11 = vmax.f32 %v1022_v9, 0.0 }
0x1627   :  { %v1039_v12 = vsel %vm1023_vm10, %v1031_v11, %v1022_v9 }
0x1628   :  { %1047 = vst [vmem:[#allocation4 + $0x38] sm:$0xff] %v1039_v12 }
0x162a   :  { %v1048_v13 = vld [vmem:[#allocation4] ss:$8 sm:$0xf]  ;;  %v1053_v14 = vld [vmem:[#allocation4 + $0x1] ss:$8 sm:$0xf] }
0x162b   :  { %v1059_v16 = vld [vmem:[#allocation4 + $0x2] ss:$8 sm:$0xf]  ;;  %v1065_v17 = vld [vmem:[#allocation4 + $0x3] ss:$8 sm:$0xf] }
0x162f   :  { %v1049_v18 = vld [vmem:[#allocation4] ss:$8 sm:$0xf0]  ;;  %v1054_v19 = vld [vmem:[#allocation4 + $0x1] ss:$8 sm:$0xf0] }
0x1630   :  { %v1050_v20 = vor.u32 %v1049_v18, %v1048_v13  ;;  %v1055_v51 = vor.u32 %v1054_v19, %v1053_v14  ;;  %v1060_v21 = vld [vmem:[#allocation4 + $0x2] ss:$8 sm:$0xf0]  ;;  %v1066_v22 = vld [vmem:[#allocation4 + $0x3] ss:$8 sm:$0xf0] }
0x1631   :  { %v1061_v10 = vor.u32 %v1060_v21, %v1059_v16  ;;  %v1067_v44 = vor.u32 %v1066_v22, %v1065_v17 }
0x1632   :  { %1051 = vst [vmem:[#allocation5] sm:$0xff] %v1050_v20 }
0x1633   :  { %1057 = vst [vmem:[#allocation5 + $0x8] sm:$0xff] %v1055_v51 }
0x1634   :  { %1063 = vst [vmem:[#allocation5 + $0x10] sm:$0xff] %v1061_v10 }
0x1635   :  { %1069 = vst [vmem:[#allocation5 + $0x18] sm:$0xff] %v1067_v44 }
0x1636   :  { %1082 = dma.vmem_to_hbm [thread:$0]  %s1075_s18, 512, %s1077_s0, [#allocation6], %s1259_s14, %s1259_s14, %s1260_s8  }
0x1637   :  { %1251 = dma.done.wait [#allocation6], 512  }
0x1638   :  { %1252 = vsyncadd [#allocation6], 4294966784 }
0x1639   :  { %1087 = vsyncpa [#allocation6], 1 }

</bundles_post_ra>
